<compile_context>
chip_gen: v6e
topology: v6e:2x2x1
jax: 0.10.0
libtpu: 0.0.40
codegen_flags: <defaults>
</compile_context>

<pallas_src>
import functools

import jax
import jax.numpy as jnp
from jax import lax
from jax.experimental import pallas as pl
from jax.experimental.pallas import tpu as pltpu


def _uggat_kernel(x_ref, madd_ref, u_ref, w_all_ref, a_blk_ref,
                  w1_ref, a_out1_ref, w2_ref, a_out2_ref,
                  out_ref, head_cat_ref, *, alpha, nheads, nhid):
    """Entire UGGAT forward on one VMEM-resident working set (single grid point)."""
    f32 = jnp.float32
    x = x_ref[...].astype(f32)                 # [N, F]
    madd = madd_ref[...]                       # [N, N]  0 on edges, -9e15 off-edge
    u = u_ref[...].astype(f32)                 # [1, N]

    def leaky_relu(v):
        return jnp.where(v > 0, v, alpha * v)

    def elu(v):
        return jnp.where(v > 0, v, jnp.exp(v) - 1.0)

    def row_dot(a_rows, m):
        # [R, D] x [N, D] -> [R, N]: contracts the feature axis directly, so a
        # [N, 1] -> [1, N] transpose (XLU permute) is never materialized.
        return lax.dot_general(a_rows, m, (((1,), (1,)), ((), ())),
                               preferred_element_type=f32)

    def masked_softmax(e):
        # `e` already carries the additive -9e15 mask; off-edge entries underflow
        # to exactly 0 in the exp (same behaviour as the where-based reference).
        m = jnp.max(e, axis=-1, keepdims=True)
        p = jnp.exp(e - m)
        denom = jnp.sum(p, axis=-1, keepdims=True)
        denom = jnp.maximum(denom, 1e-20)          # guard rows with no edges
        return p * pl.reciprocal(denom, approx=True)   # EUP vrcp, free slot

    # ---- all uncertainty-guided heads, batched ------------------------------
    # one MXU push for all head projections (K = F, lanes = H*nhid)
    wh_all = jnp.dot(x, w_all_ref[...], preferred_element_type=f32)   # [N, H*nhid]
    # one MXU push for all 2*H attention-vector products (block-diagonal a's)
    f_all = row_dot(a_blk_ref[...], wh_all)                           # [2H, N]
    f1 = f_all[:nheads]                                               # [H, N]
    f2 = f_all[nheads:]                                               # [H, N]
    # stacked logits + ONE softmax pass covering every head
    e_all = leaky_relu(f1[:, :, None] + f2[:, None, :]) + madd[None, :, :]  # [H,N,N]
    att_all = masked_softmax(e_all) * u            # uncertainty re-weighting

    # per-head aggregation; the concat is a lane-blocked store into VMEM scratch
    for h in range(nheads):                        # tiny static unroll
        wh_h = wh_all[:, h * nhid:(h + 1) * nhid]  # static lane slice
        head_h = elu(jnp.dot(att_all[h], wh_h, preferred_element_type=f32))
        head_cat_ref[:, h * nhid:(h + 1) * nhid] = head_h
    head_cat = head_cat_ref[...]                   # [N, H*nhid]

    # ---- out_att1 (no uncertainty); wrapper's elu applied here --------------
    wh1 = jnp.dot(head_cat, w1_ref[...], preferred_element_type=f32)  # [N, 256]
    a11 = a_out1_ref[0:1, :]
    a12 = a_out1_ref[1:2, :]
    g1 = jnp.sum(wh1 * a11, axis=-1, keepdims=True)                   # [N, 1]
    g2 = row_dot(a12, wh1)                                            # [1, N]
    e1 = leaky_relu(g1 + g2) + madd
    att1 = masked_softmax(e1)
    h1 = elu(jnp.dot(att1, wh1, preferred_element_type=f32))          # [N, 256]

    # ---- out_att2: the caller only keeps row 0, so only row 0 is aggregated --
    wh2 = jnp.dot(h1, w2_ref[...], preferred_element_type=f32)        # [N, Cpad]
    a21 = a_out2_ref[0:1, :]
    a22 = a_out2_ref[1:2, :]
    g1_0 = jnp.sum(wh2[0:1, :] * a21, axis=-1, keepdims=True)         # [1, 1]
    g2r = row_dot(a22, wh2)                                           # [1, N]
    e2_row0 = leaky_relu(g1_0 + g2r) + madd[0:1, :]                   # [1, N]
    att2_row0 = masked_softmax(e2_row0)                               # [1, N]
    out0 = elu(jnp.dot(att2_row0, wh2, preferred_element_type=f32))   # [1, Cpad]
    out_ref[...] = out0.astype(out_ref.dtype)


def uggat_forward(params, x, adj, uncertainty, *, alpha):
    """Eval-mode UGGAT forward (all F.dropout calls are identity)."""
    heads = params["heads"]
    nheads = len(heads)
    nhid = heads[0][0].shape[1]
    d = nheads * nhid
    n = x.shape[0]

    # Batched head weights [F, H*nhid] and block-diagonal a-vectors [2H, H*nhid].
    w_all = jnp.concatenate([w for (w, _, _) in heads], axis=1)
    a_blk = jnp.zeros((2 * nheads, d), jnp.float32)
    for h, (_, a1, a2) in enumerate(heads):
        a_blk = a_blk.at[h, h * nhid:(h + 1) * nhid].set(a1[:, 0])
        a_blk = a_blk.at[nheads + h, h * nhid:(h + 1) * nhid].set(a2[:, 0])

    w1, a11, a12 = params["out1"]                 # [H*nhid, 256], [256, 1] x2
    a_out1 = jnp.concatenate([a11.T, a12.T], axis=0)   # [2, 256]

    w2, a21, a22 = params["out2"]                 # [256, C], [C, 1] x2
    nclass = w2.shape[1]
    # Lane-dense final store: zero-pad the class dim up to a multiple of 128.
    cpad = -(-nclass // 128) * 128
    pad = cpad - nclass
    w2_p = jnp.pad(w2, ((0, 0), (0, pad)))
    a_out2 = jnp.pad(jnp.concatenate([a21.T, a22.T], axis=0),
                     ((0, 0), (0, pad)))          # [2, Cpad]

    # Additive mask replaces adj: drops 2 selects per softmax inside the kernel.
    madd = jnp.where(adj > 0, 0.0, -9e15).astype(jnp.float32)

    kernel = functools.partial(_uggat_kernel, alpha=float(alpha),
                               nheads=nheads, nhid=nhid)
    operands = (x.astype(jnp.float32), madd, uncertainty.astype(jnp.float32),
                w_all, a_blk, w1, a_out1, w2_p, a_out2)

    out_padded = pl.pallas_call(
        kernel,
        out_shape=jax.ShapeDtypeStruct((1, cpad), jnp.float32),
        in_specs=[pl.BlockSpec(memory_space=pltpu.MemorySpace.VMEM)
                  for _ in operands],
        out_specs=pl.BlockSpec(memory_space=pltpu.MemorySpace.VMEM),
        scratch_shapes=[pltpu.VMEM((n, d), jnp.float32)],   # concat(head) buffer
    )(*operands)
    return out_padded[:, :nclass]


def init_params(key, nfeat, nhid, nclass, nheads):
    """Deterministic Xavier-uniform-style init (gain ~ 1.414, as in pyGAT)."""
    def xavier(k, shape):
        fan_in, fan_out = shape[0], shape[1]
        bound = 1.414 * jnp.sqrt(6.0 / (fan_in + fan_out))
        return jax.random.uniform(k, shape, jnp.float32, -bound, bound)

    keys = jax.random.split(key, 2 * nheads + 4)
    params = {"heads": []}
    for i in range(nheads):
        w = xavier(keys[2 * i], (nfeat, nhid))
        a = xavier(keys[2 * i + 1], (2 * nhid, 1))
        params["heads"].append((w, a[:nhid, :], a[nhid:, :]))
    w1 = xavier(keys[2 * nheads], (nhid * nheads, 256))
    a1 = xavier(keys[2 * nheads + 1], (2 * 256, 1))
    w2 = xavier(keys[2 * nheads + 2], (256, nclass))
    a2 = xavier(keys[2 * nheads + 3], (2 * nclass, 1))
    params["out1"] = (w1, a1[:256, :], a1[256:, :])
    params["out2"] = (w2, a2[:nclass, :], a2[nclass:, :])
    return params


def _reference_forward(params, x, adj, uncertainty, *, alpha):
    """Pure-jnp reference of the same eval-mode semantics, for validation."""
    def leaky(v):
        return jnp.where(v > 0, v, alpha * v)

    def elu(v):
        return jnp.where(v > 0, v, jnp.exp(v) - 1.0)

    def layer(h, w, a1, a2, use_u):
        wh = h @ w
        e = leaky(wh @ a1 + (wh @ a2).T)
        masked = jnp.where(adj > 0, e, -9e15)
        att = jax.nn.softmax(masked, axis=1)
        if use_u:
            att = att * uncertainty
        return att @ wh

    hs = [elu(layer(x, w, a1, a2, True)) for (w, a1, a2) in params["heads"]]
    h = jnp.concatenate(hs, axis=1)
    w1, a11, a12 = params["out1"]
    h = elu(layer(h, w1, a11, a12, False))
    w2, a21, a22 = params["out2"]
    h = elu(layer(h, w2, a21, a22, False))
    return h[0:1, :]


if __name__ == "__main__":
    N, NFEAT, NHID, NCLASS, NHEADS = 16, 32, 16, 8, 4
    ALPHA = 0.2

    key = jax.random.PRNGKey(0)
    k_param, k_x, k_adj, k_u = jax.random.split(key, 4)

    params = init_params(k_param, NFEAT, NHID, NCLASS, NHEADS)

    x = jax.random.normal(k_x, (N, NFEAT), jnp.float32)
    adj = (jax.random.uniform(k_adj, (N, N)) > 0.5).astype(jnp.float32)
    adj = jnp.maximum(adj, jnp.eye(N, dtype=jnp.float32))      # self loops
    uncertainty = jax.random.uniform(k_u, (1, N), jnp.float32,
                                     minval=0.1, maxval=1.0)

    out = uggat_forward(params, x, adj, uncertainty, alpha=ALPHA)
    out = jax.block_until_ready(out)
    assert out.shape == (1, NCLASS), out.shape

    ref = _reference_forward(params, x, adj, uncertainty, alpha=ALPHA)
    max_err = float(jnp.max(jnp.abs(out - ref)))
    assert max_err < 1e-2, f"kernel/reference mismatch, max abs err = {max_err}"
    print("KERNEL_OK")
</pallas_src>

<mosaic_0001>
module attributes {stable_mosaic.version = 11 : i64} {
  func.func @_uggat_kernel(%arg0: memref<16x32xf32, #tpu.memory_space<vmem>>, %arg1: memref<16x16xf32, #tpu.memory_space<vmem>>, %arg2: memref<1x16xf32, #tpu.memory_space<vmem>>, %arg3: memref<32x64xf32, #tpu.memory_space<vmem>>, %arg4: memref<8x64xf32, #tpu.memory_space<vmem>>, %arg5: memref<64x256xf32, #tpu.memory_space<vmem>>, %arg6: memref<2x256xf32, #tpu.memory_space<vmem>>, %arg7: memref<256x128xf32, #tpu.memory_space<vmem>>, %arg8: memref<2x128xf32, #tpu.memory_space<vmem>>, %arg9: memref<1x128xf32, #tpu.memory_space<vmem>>, %arg10: memref<16x64xf32, #tpu.memory_space<vmem>>) attributes {dimension_semantics = [], scalar_prefetch = 0 : i64, scratch_operands = 1 : i64, tpu.core_type = #tpu.core_type<tc>} {
    %c0 = arith.constant 0 : index
    %c0_0 = arith.constant 0 : index
    %0 = vector.load %arg0[%c0, %c0_0] : memref<16x32xf32, #tpu.memory_space<vmem>>, vector<16x32xf32>
    %c0_1 = arith.constant 0 : index
    %c0_2 = arith.constant 0 : index
    %1 = vector.load %arg1[%c0_1, %c0_2] : memref<16x16xf32, #tpu.memory_space<vmem>>, vector<16x16xf32>
    %c0_3 = arith.constant 0 : index
    %c0_4 = arith.constant 0 : index
    %2 = vector.load %arg2[%c0_3, %c0_4] : memref<1x16xf32, #tpu.memory_space<vmem>>, vector<1x16xf32>
    %c0_5 = arith.constant 0 : index
    %c0_6 = arith.constant 0 : index
    %3 = vector.load %arg3[%c0_5, %c0_6] : memref<32x64xf32, #tpu.memory_space<vmem>>, vector<32x64xf32>
    %cst = arith.constant dense<0.000000e+00> : vector<16x64xf32>
    %4 = tpu.matmul %0, %3, %cst {dimension_numbers = #tpu.dot_dimension_numbers<[1], [0], [0], [1], [0, 0, 1, 1], [], []>} : vector<16x32xf32>, vector<32x64xf32>, vector<16x64xf32> -> vector<16x64xf32>
    %c0_7 = arith.constant 0 : index
    %c0_8 = arith.constant 0 : index
    %5 = vector.load %arg4[%c0_7, %c0_8] : memref<8x64xf32, #tpu.memory_space<vmem>>, vector<8x64xf32>
    %cst_9 = arith.constant dense<0.000000e+00> : vector<8x16xf32>
    %6 = tpu.matmul %5, %4, %cst_9 {dimension_numbers = #tpu.dot_dimension_numbers<[1], [1], [0], [0], [0, 0, 1, 0], [], []>} : vector<8x64xf32>, vector<16x64xf32>, vector<8x16xf32> -> vector<8x16xf32>
    %7 = vector.extract_strided_slice %6 {offsets = [0, 0], sizes = [4, 16], strides = [1, 1]} : vector<8x16xf32> to vector<4x16xf32>
    %8 = vector.extract_strided_slice %6 {offsets = [4, 0], sizes = [4, 16], strides = [1, 1]} : vector<8x16xf32> to vector<4x16xf32>
    %9 = vector.shape_cast %7 : vector<4x16xf32> to vector<4x16x1xf32>
    %10 = vector.shape_cast %8 : vector<4x16xf32> to vector<4x1x16xf32>
    %11 = vector.broadcast %9 : vector<4x16x1xf32> to vector<4x16x16xf32>
    %12 = vector.broadcast %10 : vector<4x1x16xf32> to vector<4x16x16xf32>
    %13 = arith.addf %11, %12 : vector<4x16x16xf32>
    %cst_10 = arith.constant 0.000000e+00 : f32
    %14 = vector.broadcast %cst_10 : f32 to vector<4x16x16xf32>
    %15 = arith.cmpf ogt, %13, %14 : vector<4x16x16xf32>
    %cst_11 = arith.constant 2.000000e-01 : f32
    %16 = vector.broadcast %cst_11 : f32 to vector<4x16x16xf32>
    %17 = arith.mulf %16, %13 : vector<4x16x16xf32>
    %18 = arith.select %15, %13, %17 : vector<4x16x16xi1>, vector<4x16x16xf32>
    %19 = vector.shape_cast %1 : vector<16x16xf32> to vector<1x16x16xf32>
    %20 = vector.broadcast %19 : vector<1x16x16xf32> to vector<4x16x16xf32>
    %21 = arith.addf %18, %20 : vector<4x16x16xf32>
    %cst_12 = arith.constant dense<0xFF800000> : vector<4x16xf32>
    %22 = vector.multi_reduction <maximumf>, %21, %cst_12 [2] : vector<4x16x16xf32> to vector<4x16xf32>
    %23 = vector.shape_cast %22 : vector<4x16xf32> to vector<4x16x1xf32>
    %24 = vector.broadcast %23 : vector<4x16x1xf32> to vector<4x16x16xf32>
    %25 = arith.subf %21, %24 : vector<4x16x16xf32>
    %26 = math.exp %25 : vector<4x16x16xf32>
    %cst_13 = arith.constant dense<0.000000e+00> : vector<4x16xf32>
    %27 = vector.multi_reduction <add>, %26, %cst_13 [2] : vector<4x16x16xf32> to vector<4x16xf32>
    %28 = vector.shape_cast %27 : vector<4x16xf32> to vector<4x16x1xf32>
    %cst_14 = arith.constant 9.99999968E-21 : f32
    %29 = vector.broadcast %cst_14 : f32 to vector<4x16x1xf32>
    %30 = arith.maximumf %28, %29 : vector<4x16x1xf32>
    %31 = tpu.reciprocal %30 {approx = true} : vector<4x16x1xf32> -> vector<4x16x1xf32>
    %32 = vector.broadcast %31 : vector<4x16x1xf32> to vector<4x16x16xf32>
    %33 = arith.mulf %26, %32 : vector<4x16x16xf32>
    %34 = vector.shape_cast %2 : vector<1x16xf32> to vector<1x1x16xf32>
    %35 = vector.broadcast %34 : vector<1x1x16xf32> to vector<4x16x16xf32>
    %36 = arith.mulf %33, %35 : vector<4x16x16xf32>
    %37 = vector.extract_strided_slice %4 {offsets = [0, 0], sizes = [16, 16], strides = [1, 1]} : vector<16x64xf32> to vector<16x16xf32>
    %38 = vector.extract_strided_slice %36 {offsets = [0, 0, 0], sizes = [1, 16, 16], strides = [1, 1, 1]} : vector<4x16x16xf32> to vector<1x16x16xf32>
    %39 = vector.shape_cast %38 : vector<1x16x16xf32> to vector<16x16xf32>
    %cst_15 = arith.constant dense<0.000000e+00> : vector<16x16xf32>
    %40 = tpu.matmul %39, %37, %cst_15 {dimension_numbers = #tpu.dot_dimension_numbers<[1], [0], [0], [1], [0, 0, 1, 1], [], []>} : vector<16x16xf32>, vector<16x16xf32>, vector<16x16xf32> -> vector<16x16xf32>
    %cst_16 = arith.constant 0.000000e+00 : f32
    %41 = vector.broadcast %cst_16 : f32 to vector<16x16xf32>
    %42 = arith.cmpf ogt, %40, %41 : vector<16x16xf32>
    %43 = math.exp %40 : vector<16x16xf32>
    %cst_17 = arith.constant 1.000000e+00 : f32
    %44 = vector.broadcast %cst_17 : f32 to vector<16x16xf32>
    %45 = arith.subf %43, %44 : vector<16x16xf32>
    %46 = arith.select %42, %40, %45 : vector<16x16xi1>, vector<16x16xf32>
    %c0_18 = arith.constant 0 : index
    %c0_19 = arith.constant 0 : index
    %47 = vector.load %arg10[%c0_18, %c0_19] : memref<16x64xf32, #tpu.memory_space<vmem>>, vector<16x16xf32>
    tpu.vector_store %arg10[%c0_18, %c0_19], %46 {strides = array<i32>} : memref<16x64xf32, #tpu.memory_space<vmem>>, vector<16x16xf32>,
    %48 = vector.extract_strided_slice %4 {offsets = [0, 16], sizes = [16, 16], strides = [1, 1]} : vector<16x64xf32> to vector<16x16xf32>
    %49 = vector.extract_strided_slice %36 {offsets = [1, 0, 0], sizes = [1, 16, 16], strides = [1, 1, 1]} : vector<4x16x16xf32> to vector<1x16x16xf32>
    %50 = vector.shape_cast %49 : vector<1x16x16xf32> to vector<16x16xf32>
    %cst_20 = arith.constant dense<0.000000e+00> : vector<16x16xf32>
    %51 = tpu.matmul %50, %48, %cst_20 {dimension_numbers = #tpu.dot_dimension_numbers<[1], [0], [0], [1], [0, 0, 1, 1], [], []>} : vector<16x16xf32>, vector<16x16xf32>, vector<16x16xf32> -> vector<16x16xf32>
    %cst_21 = arith.constant 0.000000e+00 : f32
    %52 = vector.broadcast %cst_21 : f32 to vector<16x16xf32>
    %53 = arith.cmpf ogt, %51, %52 : vector<16x16xf32>
    %54 = math.exp %51 : vector<16x16xf32>
    %cst_22 = arith.constant 1.000000e+00 : f32
    %55 = vector.broadcast %cst_22 : f32 to vector<16x16xf32>
    %56 = arith.subf %54, %55 : vector<16x16xf32>
    %57 = arith.select %53, %51, %56 : vector<16x16xi1>, vector<16x16xf32>
    %c0_23 = arith.constant 0 : index
    %c16 = arith.constant 16 : index
    %58 = vector.load %arg10[%c0_23, %c16] : memref<16x64xf32, #tpu.memory_space<vmem>>, vector<16x16xf32>
    tpu.vector_store %arg10[%c0_23, %c16], %57 {strides = array<i32>} : memref<16x64xf32, #tpu.memory_space<vmem>>, vector<16x16xf32>,
    %59 = vector.extract_strided_slice %4 {offsets = [0, 32], sizes = [16, 16], strides = [1, 1]} : vector<16x64xf32> to vector<16x16xf32>
    %60 = vector.extract_strided_slice %36 {offsets = [2, 0, 0], sizes = [1, 16, 16], strides = [1, 1, 1]} : vector<4x16x16xf32> to vector<1x16x16xf32>
    %61 = vector.shape_cast %60 : vector<1x16x16xf32> to vector<16x16xf32>
    %cst_24 = arith.constant dense<0.000000e+00> : vector<16x16xf32>
    %62 = tpu.matmul %61, %59, %cst_24 {dimension_numbers = #tpu.dot_dimension_numbers<[1], [0], [0], [1], [0, 0, 1, 1], [], []>} : vector<16x16xf32>, vector<16x16xf32>, vector<16x16xf32> -> vector<16x16xf32>
    %cst_25 = arith.constant 0.000000e+00 : f32
    %63 = vector.broadcast %cst_25 : f32 to vector<16x16xf32>
    %64 = arith.cmpf ogt, %62, %63 : vector<16x16xf32>
    %65 = math.exp %62 : vector<16x16xf32>
    %cst_26 = arith.constant 1.000000e+00 : f32
    %66 = vector.broadcast %cst_26 : f32 to vector<16x16xf32>
    %67 = arith.subf %65, %66 : vector<16x16xf32>
    %68 = arith.select %64, %62, %67 : vector<16x16xi1>, vector<16x16xf32>
    %c0_27 = arith.constant 0 : index
    %c32 = arith.constant 32 : index
    %69 = vector.load %arg10[%c0_27, %c32] : memref<16x64xf32, #tpu.memory_space<vmem>>, vector<16x16xf32>
    tpu.vector_store %arg10[%c0_27, %c32], %68 {strides = array<i32>} : memref<16x64xf32, #tpu.memory_space<vmem>>, vector<16x16xf32>,
    %70 = vector.extract_strided_slice %4 {offsets = [0, 48], sizes = [16, 16], strides = [1, 1]} : vector<16x64xf32> to vector<16x16xf32>
    %71 = vector.extract_strided_slice %36 {offsets = [3, 0, 0], sizes = [1, 16, 16], strides = [1, 1, 1]} : vector<4x16x16xf32> to vector<1x16x16xf32>
    %72 = vector.shape_cast %71 : vector<1x16x16xf32> to vector<16x16xf32>
    %cst_28 = arith.constant dense<0.000000e+00> : vector<16x16xf32>
    %73 = tpu.matmul %72, %70, %cst_28 {dimension_numbers = #tpu.dot_dimension_numbers<[1], [0], [0], [1], [0, 0, 1, 1], [], []>} : vector<16x16xf32>, vector<16x16xf32>, vector<16x16xf32> -> vector<16x16xf32>
    %cst_29 = arith.constant 0.000000e+00 : f32
    %74 = vector.broadcast %cst_29 : f32 to vector<16x16xf32>
    %75 = arith.cmpf ogt, %73, %74 : vector<16x16xf32>
    %76 = math.exp %73 : vector<16x16xf32>
    %cst_30 = arith.constant 1.000000e+00 : f32
    %77 = vector.broadcast %cst_30 : f32 to vector<16x16xf32>
    %78 = arith.subf %76, %77 : vector<16x16xf32>
    %79 = arith.select %75, %73, %78 : vector<16x16xi1>, vector<16x16xf32>
    %c0_31 = arith.constant 0 : index
    %c48 = arith.constant 48 : index
    %80 = vector.load %arg10[%c0_31, %c48] : memref<16x64xf32, #tpu.memory_space<vmem>>, vector<16x16xf32>
    tpu.vector_store %arg10[%c0_31, %c48], %79 {strides = array<i32>} : memref<16x64xf32, #tpu.memory_space<vmem>>, vector<16x16xf32>,
    %c0_32 = arith.constant 0 : index
    %c0_33 = arith.constant 0 : index
    %81 = vector.load %arg10[%c0_32, %c0_33] : memref<16x64xf32, #tpu.memory_space<vmem>>, vector<16x64xf32>
    %c0_34 = arith.constant 0 : index
    %c0_35 = arith.constant 0 : index
    %82 = vector.load %arg5[%c0_34, %c0_35] : memref<64x256xf32, #tpu.memory_space<vmem>>, vector<64x256xf32>
    %cst_36 = arith.constant dense<0.000000e+00> : vector<16x256xf32>
    %83 = tpu.matmul %81, %82, %cst_36 {dimension_numbers = #tpu.dot_dimension_numbers<[1], [0], [0], [1], [0, 0, 1, 1], [], []>} : vector<16x64xf32>, vector<64x256xf32>, vector<16x256xf32> -> vector<16x256xf32>
    %c0_37 = arith.constant 0 : index
    %c0_38 = arith.constant 0 : index
    %84 = vector.load %arg6[%c0_37, %c0_38] : memref<2x256xf32, #tpu.memory_space<vmem>>, vector<1x256xf32>
    %c1 = arith.constant 1 : index
    %c0_39 = arith.constant 0 : index
    %85 = vector.load %arg6[%c1, %c0_39] : memref<2x256xf32, #tpu.memory_space<vmem>>, vector<1x256xf32>
    %86 = vector.broadcast %84 : vector<1x256xf32> to vector<16x256xf32>
    %87 = arith.mulf %83, %86 : vector<16x256xf32>
    %cst_40 = arith.constant dense<0.000000e+00> : vector<16xf32>
    %88 = vector.multi_reduction <add>, %87, %cst_40 [1] : vector<16x256xf32> to vector<16xf32>
    %89 = vector.shape_cast %88 : vector<16xf32> to vector<16x1xf32>
    %cst_41 = arith.constant dense<0.000000e+00> : vector<1x16xf32>
    %90 = tpu.matmul %85, %83, %cst_41 {dimension_numbers = #tpu.dot_dimension_numbers<[1], [1], [0], [0], [0, 0, 1, 0], [], []>} : vector<1x256xf32>, vector<16x256xf32>, vector<1x16xf32> -> vector<1x16xf32>
    %91 = vector.broadcast %89 : vector<16x1xf32> to vector<16x16xf32>
    %92 = vector.broadcast %90 : vector<1x16xf32> to vector<16x16xf32>
    %93 = arith.addf %91, %92 : vector<16x16xf32>
    %cst_42 = arith.constant 0.000000e+00 : f32
    %94 = vector.broadcast %cst_42 : f32 to vector<16x16xf32>
    %95 = arith.cmpf ogt, %93, %94 : vector<16x16xf32>
    %cst_43 = arith.constant 2.000000e-01 : f32
    %96 = vector.broadcast %cst_43 : f32 to vector<16x16xf32>
    %97 = arith.mulf %96, %93 : vector<16x16xf32>
    %98 = arith.select %95, %93, %97 : vector<16x16xi1>, vector<16x16xf32>
    %99 = arith.addf %98, %1 : vector<16x16xf32>
    %cst_44 = arith.constant dense<0xFF800000> : vector<16xf32>
    %100 = vector.multi_reduction <maximumf>, %99, %cst_44 [1] : vector<16x16xf32> to vector<16xf32>
    %101 = vector.shape_cast %100 : vector<16xf32> to vector<16x1xf32>
    %102 = vector.broadcast %101 : vector<16x1xf32> to vector<16x16xf32>
    %103 = arith.subf %99, %102 : vector<16x16xf32>
    %104 = math.exp %103 : vector<16x16xf32>
    %cst_45 = arith.constant dense<0.000000e+00> : vector<16xf32>
    %105 = vector.multi_reduction <add>, %104, %cst_45 [1] : vector<16x16xf32> to vector<16xf32>
    %106 = vector.shape_cast %105 : vector<16xf32> to vector<16x1xf32>
    %cst_46 = arith.constant 9.99999968E-21 : f32
    %107 = vector.broadcast %cst_46 : f32 to vector<16x1xf32>
    %108 = arith.maximumf %106, %107 : vector<16x1xf32>
    %109 = tpu.reciprocal %108 {approx = true} : vector<16x1xf32> -> vector<16x1xf32>
    %110 = vector.broadcast %109 : vector<16x1xf32> to vector<16x16xf32>
    %111 = arith.mulf %104, %110 : vector<16x16xf32>
    %cst_47 = arith.constant dense<0.000000e+00> : vector<16x256xf32>
    %112 = tpu.matmul %111, %83, %cst_47 {dimension_numbers = #tpu.dot_dimension_numbers<[1], [0], [0], [1], [0, 0, 1, 1], [], []>} : vector<16x16xf32>, vector<16x256xf32>, vector<16x256xf32> -> vector<16x256xf32>
    %cst_48 = arith.constant 0.000000e+00 : f32
    %113 = vector.broadcast %cst_48 : f32 to vector<16x256xf32>
    %114 = arith.cmpf ogt, %112, %113 : vector<16x256xf32>
    %115 = math.exp %112 : vector<16x256xf32>
    %cst_49 = arith.constant 1.000000e+00 : f32
    %116 = vector.broadcast %cst_49 : f32 to vector<16x256xf32>
    %117 = arith.subf %115, %116 : vector<16x256xf32>
    %118 = arith.select %114, %112, %117 : vector<16x256xi1>, vector<16x256xf32>
    %c0_50 = arith.constant 0 : index
    %c0_51 = arith.constant 0 : index
    %119 = vector.load %arg7[%c0_50, %c0_51] : memref<256x128xf32, #tpu.memory_space<vmem>>, vector<256x128xf32>
    %cst_52 = arith.constant dense<0.000000e+00> : vector<16x128xf32>
    %120 = tpu.matmul %118, %119, %cst_52 {dimension_numbers = #tpu.dot_dimension_numbers<[1], [0], [0], [1], [0, 0, 1, 1], [], []>} : vector<16x256xf32>, vector<256x128xf32>, vector<16x128xf32> -> vector<16x128xf32>
    %c0_53 = arith.constant 0 : index
    %c0_54 = arith.constant 0 : index
    %121 = vector.load %arg8[%c0_53, %c0_54] : memref<2x128xf32, #tpu.memory_space<vmem>>, vector<1x128xf32>
    %c1_55 = arith.constant 1 : index
    %c0_56 = arith.constant 0 : index
    %122 = vector.load %arg8[%c1_55, %c0_56] : memref<2x128xf32, #tpu.memory_space<vmem>>, vector<1x128xf32>
    %123 = vector.extract_strided_slice %120 {offsets = [0, 0], sizes = [1, 128], strides = [1, 1]} : vector<16x128xf32> to vector<1x128xf32>
    %124 = arith.mulf %123, %121 : vector<1x128xf32>
    %cst_57 = arith.constant dense<0.000000e+00> : vector<1xf32>
    %125 = vector.multi_reduction <add>, %124, %cst_57 [1] : vector<1x128xf32> to vector<1xf32>
    %126 = vector.shape_cast %125 : vector<1xf32> to vector<1x1xf32>
    %cst_58 = arith.constant dense<0.000000e+00> : vector<1x16xf32>
    %127 = tpu.matmul %122, %120, %cst_58 {dimension_numbers = #tpu.dot_dimension_numbers<[1], [1], [0], [0], [0, 0, 1, 0], [], []>} : vector<1x128xf32>, vector<16x128xf32>, vector<1x16xf32> -> vector<1x16xf32>
    %128 = vector.broadcast %126 : vector<1x1xf32> to vector<1x16xf32>
    %129 = arith.addf %128, %127 : vector<1x16xf32>
    %cst_59 = arith.constant 0.000000e+00 : f32
    %130 = vector.broadcast %cst_59 : f32 to vector<1x16xf32>
    %131 = arith.cmpf ogt, %129, %130 : vector<1x16xf32>
    %cst_60 = arith.constant 2.000000e-01 : f32
    %132 = vector.broadcast %cst_60 : f32 to vector<1x16xf32>
    %133 = arith.mulf %132, %129 : vector<1x16xf32>
    %134 = arith.select %131, %129, %133 : vector<1x16xi1>, vector<1x16xf32>
    %135 = vector.extract_strided_slice %1 {offsets = [0, 0], sizes = [1, 16], strides = [1, 1]} : vector<16x16xf32> to vector<1x16xf32>
    %136 = arith.addf %134, %135 : vector<1x16xf32>
    %cst_61 = arith.constant dense<0xFF800000> : vector<1xf32>
    %137 = vector.multi_reduction <maximumf>, %136, %cst_61 [1] : vector<1x16xf32> to vector<1xf32>
    %138 = vector.shape_cast %137 : vector<1xf32> to vector<1x1xf32>
    %139 = vector.broadcast %138 : vector<1x1xf32> to vector<1x16xf32>
    %140 = arith.subf %136, %139 : vector<1x16xf32>
    %141 = math.exp %140 : vector<1x16xf32>
    %cst_62 = arith.constant dense<0.000000e+00> : vector<1xf32>
    %142 = vector.multi_reduction <add>, %141, %cst_62 [1] : vector<1x16xf32> to vector<1xf32>
    %143 = vector.shape_cast %142 : vector<1xf32> to vector<1x1xf32>
    %cst_63 = arith.constant 9.99999968E-21 : f32
    %144 = vector.broadcast %cst_63 : f32 to vector<1x1xf32>
    %145 = arith.maximumf %143, %144 : vector<1x1xf32>
    %146 = tpu.reciprocal %145 {approx = true} : vector<1x1xf32> -> vector<1x1xf32>
    %147 = vector.broadcast %146 : vector<1x1xf32> to vector<1x16xf32>
    %148 = arith.mulf %141, %147 : vector<1x16xf32>
    %cst_64 = arith.constant dense<0.000000e+00> : vector<1x128xf32>
    %149 = tpu.matmul %148, %120, %cst_64 {dimension_numbers = #tpu.dot_dimension_numbers<[1], [0], [0], [1], [0, 0, 1, 1], [], []>} : vector<1x16xf32>, vector<16x128xf32>, vector<1x128xf32> -> vector<1x128xf32>
    %cst_65 = arith.constant 0.000000e+00 : f32
    %150 = vector.broadcast %cst_65 : f32 to vector<1x128xf32>
    %151 = arith.cmpf ogt, %149, %150 : vector<1x128xf32>
    %152 = math.exp %149 : vector<1x128xf32>
    %cst_66 = arith.constant 1.000000e+00 : f32
    %153 = vector.broadcast %cst_66 : f32 to vector<1x128xf32>
    %154 = arith.subf %152, %153 : vector<1x128xf32>
    %155 = arith.select %151, %149, %154 : vector<1x128xi1>, vector<1x128xf32>
    %c0_67 = arith.constant 0 : index
    %c0_68 = arith.constant 0 : index
    %156 = vector.load %arg9[%c0_67, %c0_68] : memref<1x128xf32, #tpu.memory_space<vmem>>, vector<1x128xf32>
    tpu.vector_store %arg9[%c0_67, %c0_68], %155 {strides = array<i32>} : memref<1x128xf32, #tpu.memory_space<vmem>>, vector<1x128xf32>,
    return
  }
}

</mosaic_0001>

<bundles_post_ra>
// kernel: tpu_custom_call.1
= control target key start
LH: loop header
LB: loop body
LE: loop exit
PB: predicated region body
PF: predicated region fallthrough
CT: control target
= control target key end

     0   :  { %14 = vsyncpa [#allocation4], 0  ;;  %s2253_s0 = inlined_call_operand.hbm [shape: f32[16,32], index: 0, kind: input, shape index: {}]   ;;  %s2254_s1 = inlined_call_operand.hbm [shape: f32[16,16], index: 1, kind: input, shape index: {}]   ;;  %s2255_s2 = inlined_call_operand.vmem [shape: f32[1,16], index: 2, kind: input, shape index: {}]   ;;  %s2256_s3 = inlined_call_operand.hbm [shape: f32[32,64], index: 3, kind: input, shape index: {}]   ;;  %s2257_s4 = inlined_call_operand.hbm [shape: f32[8,64], index: 4, kind: input, shape index: {}]   ;;  %s2258_s5 = inlined_call_operand.hbm [shape: f32[64,256], index: 5, kind: input, shape index: {}]   ;;  %s2259_s6 = inlined_call_operand.vmem [shape: f32[2,256], index: 6, kind: input, shape index: {}]   ;;  %s2260_s7 = inlined_call_operand.hbm [shape: f32[256,128], index: 7, kind: input, shape index: {}]   ;;  %s2261_s8 = inlined_call_operand.vmem [shape: f32[2,128], index: 8, kind: input, shape index: {}]   ;;  %s2262_s9 = inlined_call_operand.hbm [shape: f32[1,128], index: 9, kind: output, shape index: {}]  }
   0x1   :  { %15 = vsyncpa [#allocation7], 0 }
   0x2   :  { %16 = vsyncpa [#allocation10], 0 }
   0x3   :  { %17 = vsyncpa [#allocation13], 0 }
   0x4   :  { %18 = vsyncpa [#allocation5], 0  ;;  %s1991_s30 = smov [#allocation6]   ;;  %s1992_s11 = smov [#allocation9]  }
   0x5   :  { %s36_s10 = sshll.u32 %s1991_s30, 4  ;;  %s63_s12 = sshll.u32 %s1992_s11, 4  ;;  %s37_s10 = int_to_ptr.vmem [resolvable:$true] %s36_s10  ;;  %s64_s12 = int_to_ptr.vmem [resolvable:$true] %s63_s12 }
   0x6   :  { %s1849_s13 = scalar_lea.vmem %s37_s10, 256  ;;  %p1854_p1 = scmp.lt.s32.totalorder %s37_s10, %s37_s10 }
   0x7   :  { %p1850_p0 = scmp.ne.s32.totalorder %s37_s10, %s1849_s13  ;;  %p1855_p2 = scmp.lt.s32.totalorder %s1849_s13, %s1849_s13 }
   0x9   :  { %p1856_p3 = por %p1855_p2, %p1854_p1 }
   0xb   :  { %p1857_p4 = pnand %p1856_p3, %p1850_p0 }
   0xd   :  { %1860 = shalt.err (!%p1857_p4)
}
   0xe   :  { %s1993_s14 = smov 128   ;;  %s1994_s15 = smov 8  }
   0xf   :  { %42 = dma.hbm_to_vmem [thread:$0]  %s2254_s1, 256, %s37_s10, [#allocation7], %s1993_s14, %s1993_s14, %s1994_s15  }
  0x10   :  { %s1869_s18 = scalar_lea.vmem %s64_s12, 128  ;;  %p1874_p6 = scmp.lt.s32.totalorder %s64_s12, %s64_s12 }
  0x11   :  { %p1870_p5 = scmp.ne.s32.totalorder %s64_s12, %s1869_s18  ;;  %p1875_p7 = scmp.lt.s32.totalorder %s1869_s18, %s1869_s18 }
  0x13   :  { %p1876_p8 = por %p1875_p7, %p1874_p6 }
  0x15   :  { %p1877_p9 = pnand %p1876_p8, %p1870_p5 }
  0x17   :  { %1880 = shalt.err (!%p1877_p9)
}
  0x18   :  { %66 = dma.hbm_to_vmem [thread:$0]  %s2257_s4, 128, %s64_s12, [#allocation10]  }
  0x19   :  { %s1995_s21 = smov [#allocation3]   ;;  %s1996_s23 = smov [#allocation8]  }
  0x1a   :  { %s24_s22 = sshll.u32 %s1995_s21, 4  ;;  %s50_s24 = sshll.u32 %s1996_s23, 4  ;;  %s25_s22 = int_to_ptr.vmem [resolvable:$true] %s24_s22  ;;  %s51_s24 = int_to_ptr.vmem [resolvable:$true] %s50_s24 }
  0x1b   :  { %s1889_s25 = scalar_lea.vmem %s25_s22, 256  ;;  %p1894_p11 = scmp.lt.s32.totalorder %s25_s22, %s25_s22 }
  0x1c   :  { %p1890_p10 = scmp.ne.s32.totalorder %s25_s22, %s1889_s25  ;;  %p1895_p12 = scmp.lt.s32.totalorder %s1889_s25, %s1889_s25 }
  0x1e   :  { %p1896_p13 = por %p1895_p12, %p1894_p11 }
  0x20   :  { %p1897_p0 = pnand %p1896_p13, %p1890_p10 }
  0x22   :  { %1900 = shalt.err (!%p1897_p0)
}
  0x23   :  { %30 = dma.hbm_to_vmem [thread:$0]  %s2253_s0, 256, %s25_s22, [#allocation4], %s1993_s14, %s1993_s14, %s1994_s15  }
  0x24   :  { %s1909_s4 = scalar_lea.vmem %s51_s24, 512  ;;  %p1914_p2 = scmp.lt.s32.totalorder %s51_s24, %s51_s24 }
  0x25   :  { %p1910_p1 = scmp.ne.s32.totalorder %s51_s24, %s1909_s4  ;;  %p1915_p3 = scmp.lt.s32.totalorder %s1909_s4, %s1909_s4 }
  0x27   :  { %p1916_p4 = por %p1915_p3, %p1914_p2 }
  0x29   :  { %p1917_p5 = pnand %p1916_p4, %p1910_p1 }
  0x2b   :  { %1920 = shalt.err (!%p1917_p5)
}
  0x2c   :  { %56 = dma.hbm_to_vmem [thread:$0]  %s2256_s3, 512, %s51_s24, [#allocation7], %s1993_s14, %s1993_s14, %s1994_s15  }
  0x2d   :  { %s1997_s29 = smov [#allocation11]  }
  0x2e   :  { %s72_s30 = sshll.u32 %s1997_s29, 4  ;;  %s73_s30 = int_to_ptr.vmem [resolvable:$true] %s72_s30 }
  0x2f   :  { %s1929_s10 = scalar_lea.vmem %s73_s30, 2048  ;;  %p1934_p7 = scmp.lt.s32.totalorder %s73_s30, %s73_s30 }
  0x30   :  { %p1930_p6 = scmp.ne.s32.totalorder %s73_s30, %s1929_s10  ;;  %p1935_p8 = scmp.lt.s32.totalorder %s1929_s10, %s1929_s10 }
  0x32   :  { %p1936_p9 = por %p1935_p8, %p1934_p7 }
  0x34   :  { %p1937_p10 = pnand %p1936_p9, %p1930_p6 }
  0x36   :  { %1940 = shalt.err (!%p1937_p10)
}
  0x37   :  { %s1998_s0 = smov 256   ;;  %s1999_s11 = smov 16  }
  0x38   :  { %78 = dma.hbm_to_vmem [thread:$0]  %s2258_s5, 2048, %s73_s30, [#allocation10], %s1998_s0, %s1998_s0, %s1999_s11  }
  0x39   :  { %s2000_s16 = smov [#allocation12]  }
  0x3a   :  { %s86_s17 = sshll.u32 %s2000_s16, 4  ;;  %s87_s17 = int_to_ptr.vmem [resolvable:$true] %s86_s17 }
  0x3b   :  { %s1949_s3 = scalar_lea.vmem %s87_s17, 4096  ;;  %p1954_p12 = scmp.lt.s32.totalorder %s87_s17, %s87_s17 }
  0x3c   :  { %p1950_p11 = scmp.ne.s32.totalorder %s87_s17, %s1949_s3  ;;  %p1955_p13 = scmp.lt.s32.totalorder %s1949_s3, %s1949_s3 }
  0x3e   :  { %p1956_p0 = por %p1955_p13, %p1954_p12 }
  0x40   :  { %p1957_p1 = pnand %p1956_p0, %p1950_p11 }
  0x42   :  { %1960 = shalt.err (!%p1957_p1)
}
  0x43   :  { %92 = dma.hbm_to_vmem [thread:$0]  %s2260_s7, 4096, %s87_s17, [#allocation13], %s1993_s14, %s1993_s14, %s1994_s15  }
  0x44   :  { %1981 = dma.done.wait [#allocation4], 256  }
  0x45   :  { %1982 = vsyncadd [#allocation4], 4294967040 }
  0x46   :  { %1983 = dma.done.wait [#allocation7], 768  }
  0x47   :  { %1984 = vsyncadd [#allocation7], 4294966528 }
  0x48   :  { %1985 = dma.done.wait [#allocation10], 2176  }
  0x49   :  { %1986 = vsyncadd [#allocation10], 4294965120 }
  0x4a   :  { %1987 = dma.done.wait [#allocation13], 4096  }
  0x4b   :  { %1988 = vsyncadd [#allocation13], 4294963200  ;;  %vm122_vm0 = vcmask 261120   ;;  %v121_v0 = vld [vmem:[#allocation8 + $0x18] sm:$0xff]  ;;  %v120_v1 = vld [vmem:[#allocation8 + $0x10] sm:$0xff]  ;;  %v2001_v6 = vmov 0.0   ;;  %v285_v10 = vlaneseq }
  0x4c   :  { %1691 = vmatprep.subr.mxu0 %v121_v0  ;;  %v113_v2 = vld [vmem:[#allocation3] sm:$0xff]  ;;  %v119_v3 = vld [vmem:[#allocation8 + $0x8] sm:$0xff]  ;;  %vm2002_vm1 = vmmov 0   ;;  %vm205_vm2 = vcmask 523264   ;;  %v2003_v11 = vmov 1966171168  }
  0x4d   :  { %1692 = vmatpush3.msra.mxu0 %v121_v0  ;;  %1699 = vmatprep.mubr.msk.f32.mxu0 %vm122_vm0, %v113_v2  ;;  %v118_v4 = vld [vmem:[#allocation8] sm:$0xff]  ;;  %v114_v5 = vld [vmem:[#allocation3 + $0x8] sm:$0xff]  ;;  %v332_v12 = vunpack.c.l.s4 %v2003_v11  ;;  %v286_v13 = vshrl.u32 %v285_v10, 7  ;;  %v2118_v38 = vld [vmem:[#allocation6] sm:$0xff]  ;;  %vm415_vm5 = vcmask 130048   ;;  %s2004_s5 = smov 112  }
  0x4e   :  { %1693 = vmatprep.subr.mxu0 %v120_v1  ;;  %v204_v9 = vld [vmem:[#allocation9] sm:$0xff]  ;;  %v2122_v50 = vld [vmem:[#allocation6 + $0x8] sm:$0xff]  ;;  %s2005_s7 = smov 96   ;;  %s2006_s14 = smov 80  }
  0x4f   :  { %1694 = vmatpush3.msra.mxu0 %v120_v1  ;;  %v333_v14 = vunpack.c.0.s8 %v332_v12  ;;  %v2110_v15 = vsub.s32 0, %v286_v13  ;;  %v2112_v16 = vsub.s32 1, %v286_v13  ;;  %v309_v24 = vsub.s32 2, %v286_v13  ;;  %s2008_s21 = smov 48  }
  0x50   :  { %1695 = vmatprep.subr.mxu0 %v119_v3  ;;  %v320_v29 = vsub.s32 3, %v286_v13 }
  0x51   :  { %1696 = vmatpush3.msra.mxu0 %v119_v3  ;;  %v336_v17 = vsub.s32 %v333_v14, %v286_v13 }
  0x52   :  { %1697 = vmatprep.subr.mxu0 %v118_v4 }
  0x53   :  { %1698 = vmatpush3.msra.mxu0 %v118_v4 }
  0x54   :  { %1700 = vmatmul.mubr.msk.f32.vlgmr.msra.gmra.mxu0 %vm122_vm0, %v114_v5  ;;  %1702 = vmatprep.subr.mxu0 %v2001_v6 }
  0x55   :  { %1706 = vmatprep.mubr.msk.f32.mxu0 %vm2002_vm1, %v2001_v6 }
 0x114   :  { %v2096_v7 = vpop.f32.mrf.mxu0 }
 0x115   :  { %1703 = vmatpush3.xpose.msk.msra.mxu0 %vm205_vm2, %v2096_v7 }
 0x116   :  { %1704 = vmatprep.subr.mxu0 %v2001_v6  ;;  %v2101_v8 = vpop.f32.mrf.mxu0 }
 0x119   :  { %1705 = vmatpush3.xpose.msk.msra.mxu0 %vm205_vm2, %v2101_v8 }
 0x11a   :  { %1709 = vmatprep.subr.mxu0 %v2096_v7 }
 0x11c   :  { %1707 = vmatmul.mubr.msk.f32.vlgmr.msra.gmra.mxu0 %vm205_vm2, %v204_v9 }
 0x11d   :  { %1710 = vmatpush3.msra.mxu0 %v2096_v7 }
 0x11e   :  { %1711 = vmatprep.subr.mxu0 %v2101_v8 }
 0x11f   :  { %1712 = vmatpush3.msra.mxu0 %v2101_v8 }
 0x1dc   :  { %v281_v18 = vpop.f32.mrf.mxu0 }
 0x1dd   :  { %v330_v19 = vcombine.high %v281_v18, %v281_v18  ;;  %v299_v20 = vrot.slane %v281_v18, %v2112_v16  ;;  %v288_v21 = vrot.slane %v281_v18, %v2110_v15  ;;  %v310_v28 = vrot.slane %v281_v18, %v309_v24 }
 0x1de   :  { %v1708_v22 = vpop.f32.mrf.mxu0  ;;  %v321_v30 = vrot.slane %v281_v18, %v320_v29 }
 0x1df   :  { %301 = vbcast.lane.b32.xlu1 %v299_v20, 256  ;;  %290 = vbcast.lane.b32.xlu0 %v288_v21, 256  ;;  %v337_v23 = vrot.slane %v330_v19, %v336_v17 }
 0x1e1   :  { %v338_v25 = vcombine.high %v337_v23, %v337_v23  ;;  %v345_v26 = vrot.slane %v337_v23, %v336_v17 }
 0x1e3   :  { %305 = vbcast.lane.b32.xlu1 %v299_v20, 264  ;;  %294 = vbcast.lane.b32.xlu0 %v288_v21, 264  ;;  %v352_v27 = vrot.slane %v338_v25, %v336_v17  ;;  %v358_v32 = vrot.slane %v345_v26, %v2110_v15  ;;  %v353_v37 = vcombine.high %v345_v26, %v345_v26 }
 0x1e5   :  { %v362_v31 = vrot.slane %v352_v27, %v2110_v15  ;;  %v366_v47 = vrot.slane %v353_v37, %v2110_v15  ;;  %v354_v49 = vcombine.high %v352_v27, %v352_v27 }
 0x1e7   :  { %316 = vbcast.lane.b32.xlu1 %v310_v28, 264  ;;  %312 = vbcast.lane.b32.xlu0 %v310_v28, 256  ;;  %v370_v61 = vrot.slane %v354_v49, %v2110_v15 }
 0x1eb   :  { %327 = vbcast.lane.b32.xlu1 %v321_v30, 264  ;;  %323 = vbcast.lane.b32.xlu0 %v321_v30, 256 }
 0x251   :  { %v302_v33 = vpop.permute.xlu1 %301  ;;  %v291_v34 = vpop.permute.xlu0 %290 }
 0x252   :  { %v377_v35 = vadd.f32 %v362_v31, %v302_v33  ;;  %v375_v36 = vadd.f32 %v358_v32, %v291_v34 }
 0x254   :  { %vm385_vm3 = vcmp.gt.f32.partialorder %v377_v35, 0.0  ;;  %v393_v39 = vmul.f32 0.2, %v377_v35  ;;  %vm383_vm4 = vcmp.gt.f32.partialorder %v375_v36, 0.0  ;;  %v391_v40 = vmul.f32 0.2, %v375_v36 }
 0x255   :  { %v306_v41 = vpop.permute.xlu1 %305  ;;  %v295_v42 = vpop.permute.xlu0 %294 }
 0x256   :  { %v378_v43 = vadd.f32 %v362_v31, %v306_v41  ;;  %v376_v44 = vadd.f32 %v358_v32, %v295_v42  ;;  %v399_v45 = vsel %vm383_vm4, %v375_v36, %v391_v40  ;;  %v401_v46 = vsel %vm385_vm3, %v377_v35, %v393_v39 }
 0x257   :  { %v407_v48 = vadd.f32 %v399_v45, %v2118_v38  ;;  %v409_v56 = vadd.f32 %v401_v46, %v2118_v38 }
 0x258   :  { %vm386_vm6 = vcmp.gt.f32.partialorder %v378_v43, 0.0  ;;  %v394_v51 = vmul.f32 0.2, %v378_v43  ;;  %vm384_vm7 = vcmp.gt.f32.partialorder %v376_v44, 0.0  ;;  %v392_v52 = vmul.f32 0.2, %v376_v44 }
 0x259   :  { %v317_v53 = vpop.permute.xlu1 %316  ;;  %v313_v54 = vpop.permute.xlu0 %312  ;;  %v416_v55 = vsel %vm415_vm5, %v407_v48, -inf  ;;  %v422_v3 = vsel %vm415_vm5, %v409_v56, -inf }
 0x25a   :  { %v380_v57 = vadd.f32 %v366_v47, %v317_v53  ;;  %v379_v58 = vadd.f32 %v366_v47, %v313_v54  ;;  %417 = vmax.xlane.f32.xlu0 %v416_v55  ;;  %v400_v59 = vsel %vm384_vm7, %v376_v44, %v392_v52  ;;  %v402_v60 = vsel %vm386_vm6, %v378_v43, %v394_v51 }
 0x25b   :  { %v408_v62 = vadd.f32 %v400_v59, %v2122_v50  ;;  %v410_v5 = vadd.f32 %v402_v60, %v2122_v50  ;;  %vm724_vm7 = vcmask 261248  }
 0x25c   :  { %vm388_vm8 = vcmp.gt.f32.partialorder %v380_v57, 0.0  ;;  %v396_v63 = vmul.f32 0.2, %v380_v57  ;;  %vm387_vm9 = vcmp.gt.f32.partialorder %v379_v58, 0.0  ;;  %v395_v0 = vmul.f32 0.2, %v379_v58 }
 0x25d   :  { %v328_v1 = vpop.permute.xlu1 %327  ;;  %v324_v2 = vpop.permute.xlu0 %323  ;;  %v419_v4 = vsel %vm415_vm5, %v408_v62, -inf  ;;  %v425_v18 = vsel %vm415_vm5, %v410_v5, -inf }
 0x25e   :  { %v382_v9 = vadd.f32 %v370_v61, %v328_v1  ;;  %v381_v10 = vadd.f32 %v370_v61, %v324_v2  ;;  %423 = vmax.xlane.f32.xlu0 %v422_v3  ;;  %420 = vmax.xlane.f32.xlu1 %v419_v4  ;;  %v403_v11 = vsel %vm387_vm9, %v379_v58, %v395_v0  ;;  %vm940_vm9 = vcmask 523648  }
 0x25f   :  { %v411_v12 = vadd.f32 %v403_v11, %v2118_v38  ;;  %v404_v13 = vsel %vm388_vm8, %v380_v57, %v396_v63  ;;  %vm832_vm8 = vcmask 392448  }
 0x260   :  { %vm390_vm10 = vcmp.gt.f32.partialorder %v382_v9, 0.0  ;;  %v398_v14 = vmul.f32 0.2, %v382_v9  ;;  %vm389_vm11 = vcmp.gt.f32.partialorder %v381_v10, 0.0  ;;  %v397_v17 = vmul.f32 0.2, %v381_v10 }
 0x261   :  { %v428_v19 = vsel %vm415_vm5, %v411_v12, -inf  ;;  %v412_v20 = vadd.f32 %v404_v13, %v2122_v50 }
 0x262   :  { %426 = vmax.xlane.f32.xlu0 %v425_v18  ;;  %429 = vmax.xlane.f32.xlu1 %v428_v19  ;;  %v405_v21 = vsel %vm389_vm11, %v381_v10, %v397_v17  ;;  %v406_v22 = vsel %vm390_vm10, %v382_v9, %v398_v14 }
 0x263   :  { %v413_v23 = vadd.f32 %v405_v21, %v2118_v38  ;;  %v431_v24 = vsel %vm415_vm5, %v412_v20, -inf  ;;  %v414_v26 = vadd.f32 %v406_v22, %v2122_v50 }
 0x265   :  { %v434_v25 = vsel %vm415_vm5, %v413_v23, -inf  ;;  %v437_v27 = vsel %vm415_vm5, %v414_v26, -inf }
 0x266   :  { %432 = vmax.xlane.f32.xlu0 %v431_v24  ;;  %435 = vmax.xlane.f32.xlu1 %v434_v25 }
 0x26a   :  { %438 = vmax.xlane.f32.xlu0 %v437_v27 }
 0x277   :  { %621 = vrot.lane.b32.xlu1 %v2096_v7, %s2004_s5 }
 0x27b   :  { %729 = vrot.lane.b32.xlu1 %v2096_v7, %s2005_s7 }
 0x27f   :  { %837 = vrot.lane.b32.xlu1 %v2096_v7, %s2006_s14 }
 0x280   :  { %619 = vrot.lane.b32.xlu0 %v2101_v8, %s2004_s5 }
 0x2e3   :  { %v418_v28 = vpop.xlane.xlu0 %417 }
 0x2e4   :  { %v440_v29 = vsub.f32 %v407_v48, %v418_v28  ;;  %v1594_v28 = vld [vmem:[%s2255_s2] ss:$0 sm:$0xff]  ;;  %s2007_s2 = smov 32  }
 0x2e6   :  { %v448_v30 = vmul.f32 1.442695, %v440_v29 }
 0x2e7   :  { %v421_v31 = vpop.xlane.xlu1 %420  ;;  %v424_v32 = vpop.xlane.xlu0 %423 }
 0x2e8   :  { %1770 = vpow2.f32 %v448_v30  ;;  %v441_v33 = vsub.f32 %v408_v62, %v421_v31  ;;  %v442_v34 = vsub.f32 %v409_v56, %v424_v32 }
 0x2ea   :  { %v450_v35 = vmul.f32 1.442695, %v441_v33  ;;  %v452_v36 = vmul.f32 1.442695, %v442_v34 }
 0x2eb   :  { %v430_v37 = vpop.xlane.xlu1 %429  ;;  %v427_v39 = vpop.xlane.xlu0 %426 }
 0x2ec   :  { %1772 = vpow2.f32 %v450_v35  ;;  %v444_v40 = vsub.f32 %v411_v12, %v430_v37  ;;  %v443_v41 = vsub.f32 %v410_v5, %v427_v39 }
 0x2ed   :  { %1774 = vpow2.f32 %v452_v36 }
 0x2ee   :  { %v456_v42 = vmul.f32 1.442695, %v444_v40  ;;  %v454_v7 = vmul.f32 1.442695, %v443_v41 }
 0x2ef   :  { %v436_v43 = vpop.xlane.xlu1 %435  ;;  %v433_v44 = vpop.xlane.xlu0 %432 }
 0x2f0   :  { %1776 = vpow2.f32 %v456_v42  ;;  %v446_v45 = vsub.f32 %v413_v23, %v436_v43  ;;  %v445_v46 = vsub.f32 %v412_v20, %v433_v44 }
 0x2f1   :  { %1778 = vpow2.f32 %v454_v7 }
 0x2f2   :  { %v460_v47 = vmul.f32 1.442695, %v446_v45  ;;  %v458_v48 = vmul.f32 1.442695, %v445_v46 }
 0x2f3   :  { %v622_v49 = vpop.permute.xlu1 %621  ;;  %v439_v51 = vpop.xlane.xlu0 %438 }
 0x2f4   :  { %1780 = vpow2.f32 %v460_v47  ;;  %v447_v52 = vsub.f32 %v414_v26, %v439_v51  ;;  %1716 = vmatprep.subr.mxu1 %v622_v49 }
 0x2f5   :  { %v1771_v53 = vpop.eup %1770  ;;  %1782 = vpow2.f32 %v458_v48  ;;  %1717 = vmatpush3.msra.mxu1 %v622_v49 }
 0x2f6   :  { %v462_v54 = vmul.f32 1.442695, %v447_v52  ;;  %v464_v55 = vsel %vm415_vm5, %v1771_v53, 0.0 }
 0x2f7   :  { %v2147_v56 = vpop.permute.xlu1 %729  ;;  %465 = vadd.xlane.f32.xlu1 %v464_v55  ;;  %v620_v57 = vpop.permute.xlu0 %619 }
 0x2f8   :  { %1784 = vpow2.f32 %v462_v54  ;;  %1718 = vmatprep.subr.mxu1 %v620_v57  ;;  %1723 = vmatprep.subr.mxu0 %v2147_v56 }
 0x2f9   :  { %v1773_v58 = vpop.eup %1772  ;;  %1719 = vmatpush3.msra.mxu1 %v620_v57 }
 0x2fa   :  { %v1775_v59 = vpop.eup %1774  ;;  %v467_v60 = vsel %vm415_vm5, %v1773_v58, 0.0 }
 0x2fb   :  { %468 = vadd.xlane.f32.xlu0 %v467_v60  ;;  %v2151_v61 = vpop.permute.xlu1 %837  ;;  %v470_v62 = vsel %vm415_vm5, %v1775_v59, 0.0 }
 0x2fc   :  { %471 = vadd.xlane.f32.xlu1 %v470_v62  ;;  %1730 = vmatprep.subr.mxu1 %v2151_v61 }
 0x2fd   :  { %v1777_v63 = vpop.eup %1776 }
 0x2fe   :  { %v1779_v0 = vpop.eup %1778  ;;  %v476_v1 = vsel %vm415_vm5, %v1777_v63, 0.0 }
 0x2ff   :  { %v473_v2 = vsel %vm415_vm5, %v1779_v0, 0.0 }
 0x300   :  { %477 = vadd.xlane.f32.xlu1 %v476_v1  ;;  %474 = vadd.xlane.f32.xlu0 %v473_v2 }
 0x301   :  { %v1781_v3 = vpop.eup %1780 }
 0x302   :  { %v1783_v4 = vpop.eup %1782  ;;  %v482_v5 = vsel %vm415_vm5, %v1781_v3, 0.0 }
 0x303   :  { %v479_v9 = vsel %vm415_vm5, %v1783_v4, 0.0 }
 0x304   :  { %483 = vadd.xlane.f32.xlu1 %v482_v5  ;;  %480 = vadd.xlane.f32.xlu0 %v479_v9 }
 0x305   :  { %v2159_v10 = vpop.eup %1784 }
 0x306   :  { %v485_v11 = vsel %vm415_vm5, %v2159_v10, 0.0 }
 0x308   :  { %486 = vadd.xlane.f32.xlu0 %v485_v11  ;;  %v960_v11 = vld [vmem:[#allocation11 + $0x78] sm:$0xff] }
 0x315   :  { %835 = vrot.lane.b32.xlu1 %v2101_v8, %s2006_s14 }
 0x31e   :  { %727 = vrot.lane.b32.xlu0 %v2101_v8, %s2005_s7 }
 0x380   :  { %v466_v12 = vpop.xlane.xlu1 %465 }
 0x381   :  { %v488_v13 = vmax.f32 %v466_v12, 1e-20  ;;  %v959_v12 = vld [vmem:[#allocation11 + $0x70] sm:$0xff] }
 0x383   :  { %1786 = vrcp.f32 %v488_v13  ;;  %v958_v13 = vld [vmem:[#allocation11 + $0x68] sm:$0xff] }
 0x384   :  { %v469_v14 = vpop.xlane.xlu0 %468 }
 0x385   :  { %v472_v17 = vpop.xlane.xlu1 %471  ;;  %v489_v18 = vmax.f32 %v469_v14, 1e-20 }
 0x386   :  { %v490_v19 = vmax.f32 %v472_v17, 1e-20 }
 0x387   :  { %1788 = vrcp.f32 %v489_v18  ;;  %v957_v18 = vld [vmem:[#allocation11 + $0x60] sm:$0xff] }
 0x388   :  { %1790 = vrcp.f32 %v490_v19 }
 0x389   :  { %v478_v20 = vpop.xlane.xlu1 %477  ;;  %v475_v21 = vpop.xlane.xlu0 %474 }
 0x38a   :  { %v492_v22 = vmax.f32 %v478_v20, 1e-20  ;;  %v491_v23 = vmax.f32 %v475_v21, 1e-20 }
 0x38c   :  { %1792 = vrcp.f32 %v492_v22 }
 0x38d   :  { %1794 = vrcp.f32 %v491_v23  ;;  %v484_v24 = vpop.xlane.xlu1 %483  ;;  %v481_v25 = vpop.xlane.xlu0 %480  ;;  %v956_v23 = vld [vmem:[#allocation11 + $0x58] sm:$0xff] }
 0x38e   :  { %v494_v26 = vmax.f32 %v484_v24, 1e-20  ;;  %v493_v27 = vmax.f32 %v481_v25, 1e-20  ;;  %v955_v24 = vld [vmem:[#allocation11 + $0x50] sm:$0xff]  ;;  %v954_v25 = vld [vmem:[#allocation11 + $0x48] sm:$0xff] }
 0x390   :  { %v1787_v8 = vpop.eup %1786  ;;  %1796 = vrcp.f32 %v494_v26  ;;  %v953_v26 = vld [vmem:[#allocation11 + $0x40] sm:$0xff] }
 0x391   :  { %1798 = vrcp.f32 %v493_v27  ;;  %v487_v29 = vpop.xlane.xlu0 %486  ;;  %v504_v30 = vmul.f32 %v1787_v8, %v1771_v53  ;;  %v836_v51 = vpop.permute.xlu1 %835  ;;  %v952_v8 = vld [vmem:[#allocation11 + $0x38] sm:$0xff] }
 0x392   :  { %v495_v31 = vmax.f32 %v487_v29, 1e-20  ;;  %v950_v29 = vld [vmem:[#allocation11 + $0x28] sm:$0xff] }
 0x393   :  { %v518_v32 = vmul.f32 %v1594_v28, %v504_v30 }
 0x394   :  { %v1789_v33 = vpop.eup %1788  ;;  %1800 = vrcp.f32 %v495_v31  ;;  %v949_v31 = vld [vmem:[#allocation11 + $0x20] sm:$0xff] }
 0x395   :  { %v1791_v34 = vpop.eup %1790  ;;  %1713 = vmatprep.mubr.msk.f32.mxu0 %vm415_vm5, %v518_v32  ;;  %v505_v35 = vmul.f32 %v1789_v33, %v1773_v58  ;;  %v728_v42 = vpop.permute.xlu0 %727 }
 0x396   :  { %v506_v36 = vmul.f32 %v1791_v34, %v1775_v59 }
 0x397   :  { %v519_v37 = vmul.f32 %v1594_v28, %v505_v35  ;;  %v948_v35 = vld [vmem:[#allocation11 + $0x18] sm:$0xff] }
 0x398   :  { %v520_v39 = vmul.f32 %v1594_v28, %v506_v36  ;;  %v947_v36 = vld [vmem:[#allocation11 + $0x10] sm:$0xff] }
 0x399   :  { %v1793_v40 = vpop.eup %1792  ;;  %1714 = vmatmul.mubr.msk.f32.vlgmr.msra.gmra.mxu0 %vm415_vm5, %v519_v37  ;;  %v946_v37 = vld [vmem:[#allocation11 + $0x8] sm:$0xff] }
 0x39a   :  { %v1795_v41 = vpop.eup %1794  ;;  %1720 = vmatprep.mubr.msk.f32.mxu1 %vm415_vm5, %v520_v39  ;;  %1724 = vmatpush3.msra.mxu0 %v2147_v56  ;;  %v508_v7 = vmul.f32 %v1793_v40, %v1777_v63  ;;  %v945_v40 = vld [vmem:[#allocation11] sm:$0xff] }
 0x39b   :  { %1725 = vmatprep.subr.mxu0 %v728_v42  ;;  %v507_v43 = vmul.f32 %v1795_v41, %v1779_v0 }
 0x39c   :  { %1726 = vmatpush3.msra.mxu0 %v728_v42  ;;  %v522_v44 = vmul.f32 %v1594_v28, %v508_v7 }
 0x39d   :  { %v1797_v45 = vpop.eup %1796  ;;  %v521_v46 = vmul.f32 %v1594_v28, %v507_v43  ;;  %983 = vmatprep.subr.mxu0 %v960_v11 }
 0x39e   :  { %v1799_v47 = vpop.eup %1798  ;;  %1727 = vmatprep.mubr.msk.f32.mxu0 %vm415_vm5, %v522_v44  ;;  %v510_v48 = vmul.f32 %v1797_v45, %v1781_v3 }
 0x39f   :  { %1721 = vmatmul.mubr.msk.f32.vlgmr.msra.gmra.mxu1 %vm415_vm5, %v521_v46  ;;  %v509_v49 = vmul.f32 %v1799_v47, %v1783_v4 }
 0x3a0   :  { %1731 = vmatpush3.msra.mxu1 %v2151_v61  ;;  %v524_v52 = vmul.f32 %v1594_v28, %v510_v48 }
 0x3a1   :  { %v1801_v53 = vpop.eup %1800  ;;  %1732 = vmatprep.subr.mxu1 %v836_v51  ;;  %v523_v54 = vmul.f32 %v1594_v28, %v509_v49 }
 0x3a2   :  { %1733 = vmatpush3.msra.mxu1 %v836_v51  ;;  %1734 = vmatprep.mubr.msk.f32.mxu1 %vm415_vm5, %v524_v52  ;;  %v511_v55 = vmul.f32 %v1801_v53, %v2159_v10 }
 0x3a3   :  { %1728 = vmatmul.mubr.msk.f32.vlgmr.msra.gmra.mxu0 %vm415_vm5, %v523_v54 }
 0x3a4   :  { %v525_v56 = vmul.f32 %v1594_v28, %v511_v55  ;;  %1031 = vmatprep.mubr.f32.mxu0 %v2001_v6  ;;  %984 = vmatpush1.msra.mxu0 %v959_v12  ;;  %v951_v28 = vld [vmem:[#allocation11 + $0x30] sm:$0xff] }
 0x3a5   :  { %985 = vmatprep.subr.mxu0 %v958_v13 }
 0x3a6   :  { %1735 = vmatmul.mubr.msk.f32.vlgmr.msra.gmra.mxu1 %vm415_vm5, %v525_v56  ;;  %986 = vmatpush1.msra.mxu0 %v957_v18 }
 0x3a7   :  { %987 = vmatprep.subr.mxu0 %v956_v23 }
 0x3a8   :  { %988 = vmatpush1.msra.mxu0 %v955_v24 }
 0x3a9   :  { %989 = vmatprep.subr.mxu0 %v954_v25 }
 0x3aa   :  { %990 = vmatpush1.msra.mxu0 %v953_v26 }
 0x3ab   :  { %991 = vmatprep.subr.mxu0 %v952_v8 }
 0x3ac   :  { %992 = vmatpush1.msra.mxu0 %v951_v28 }
 0x3ad   :  { %993 = vmatprep.subr.mxu0 %v950_v29 }
 0x3ae   :  { %994 = vmatpush1.msra.mxu0 %v949_v31 }
 0x3af   :  { %995 = vmatprep.subr.mxu0 %v948_v35 }
 0x3b0   :  { %996 = vmatpush1.msra.mxu0 %v947_v36 }
 0x3b1   :  { %997 = vmatprep.subr.mxu0 %v946_v37 }
 0x3b2   :  { %998 = vmatpush1.msra.mxu0 %v945_v40 }
 0x3b3   :  { %1737 = vmatprep.subr.mxu0 %v2001_v6 }
 0x459   :  { %v1715_v57 = vpop.f32.mrf.mxu0 }
 0x45a   :  { %v611_v58 = vmul.f32 1.442695, %v1715_v57  ;;  %vm608_vm12 = vcmp.gt.f32.partialorder %v1715_v57, 0.0 }
 0x45b   :  { %v598_v59 = vpop.f32.mrf.mxu0 }
 0x45c   :  { %1802 = vpow2.f32 %v611_v58  ;;  %v609_v60 = vmul.f32 1.442695, %v598_v59  ;;  %vm607_vm13 = vcmp.gt.f32.partialorder %v598_v59, 0.0 }
 0x45e   :  { %1804 = vpow2.f32 %v609_v60 }
 0x45f   :  { %v2182_v61 = vpop.f32.mrf.mxu1 }
 0x460   :  { %v710_v0 = vmul.f32 1.442695, %v2182_v61  ;;  %vm707_vm3 = vcmp.gt.f32.partialorder %v2182_v61, 0.0 }
 0x461   :  { %v697_v62 = vpop.f32.mrf.mxu1 }
 0x462   :  { %v708_v63 = vmul.f32 1.442695, %v697_v62  ;;  %vm706_vm14 = vcmp.gt.f32.partialorder %v697_v62, 0.0 }
 0x463   :  { %v2185_v1 = vpop.f32.mrf.mxu0 }
 0x464   :  { %1806 = vpow2.f32 %v708_v63  ;;  %v818_v3 = vmul.f32 1.442695, %v2185_v1  ;;  %vm815_vm4 = vcmp.gt.f32.partialorder %v2185_v1, 0.0 }
 0x465   :  { %v2187_v2 = vpop.f32.mrf.mxu0  ;;  %1808 = vpow2.f32 %v710_v0  ;;  %v1044_v0 = vld [vmem:[%s2259_s6] ss:$2 sm:$0x3] }
 0x466   :  { %v816_v4 = vmul.f32 1.442695, %v2187_v2  ;;  %v2191_v5 = vpop.f32.mrf.mxu1  ;;  %vm814_vm15 = vcmp.gt.f32.partialorder %v2187_v2, 0.0 }
 0x467   :  { %v926_v9 = vmul.f32 1.442695, %v2191_v5  ;;  %vm923_vm6 = vcmp.gt.f32.partialorder %v2191_v5, 0.0 }
 0x468   :  { %1810 = vpow2.f32 %v816_v4  ;;  %v2194_v10 = vpop.f32.mrf.mxu1 }
 0x469   :  { %v1803_v14 = vpop.eup %1802  ;;  %v924_v17 = vmul.f32 1.442695, %v2194_v10  ;;  %1812 = vpow2.f32 %v818_v3  ;;  %vm922_vm0 = vcmp.gt.f32.partialorder %v2194_v10, 0.0 }
 0x46a   :  { %v1598_v19 = vadd.f32 -1.0, %v1803_v14 }
 0x46b   :  { %v1805_v20 = vpop.eup %1804  ;;  %1814 = vpow2.f32 %v924_v17 }
 0x46c   :  { %v616_v21 = vsel %vm608_vm12, %v1715_v57, %v1598_v19  ;;  %v1597_v22 = vadd.f32 -1.0, %v1805_v20  ;;  %1816 = vpow2.f32 %v926_v9 }
 0x46d   :  { %618 = vst.msk [vmem:[#allocation2 + $0x8] sm:$0xff] %vm415_vm5, %v616_v21 }
 0x46e   :  { %v615_v27 = vsel %vm607_vm13, %v598_v59, %v1597_v22 }
 0x46f   :  { %617 = vst.msk [vmem:[#allocation2] sm:$0xff] %vm415_vm5, %v615_v27 }
 0x471   :  { %v1807_v30 = vpop.eup %1806 }
 0x472   :  { %v1601_v32 = vadd.f32 -1.0, %v1807_v30  ;;  %v1809_v33 = vpop.eup %1808 }
 0x473   :  { %v1602_v44 = vadd.f32 -1.0, %v1809_v33 }
 0x474   :  { %v714_v34 = vsel %vm706_vm14, %v697_v62, %v1601_v32  ;;  %v1613_v62 = vld [vmem:[%s2259_s6 + $0x1] ss:$2 sm:$0x3] }
 0x475   :  { %v1811_v39 = vpop.eup %1810  ;;  %718 = vrot.lane.b32.xlu0 %v714_v34, %s1999_s11  ;;  %v715_v49 = vsel %vm707_vm3, %v2182_v61, %v1602_v44  ;;  %v1076_v63 = vrot.slane %v1613_v62, %v2112_v16  ;;  %v1072_v18 = vrot.slane %v1613_v62, %v2110_v15  ;;  %v1314_v62 = vld [vmem:[#allocation12 + $0xc0] sm:$0xff]  ;;  %vm1479_vm3 = vcmask 122880  }
 0x476   :  { %v1605_v41 = vadd.f32 -1.0, %v1811_v39  ;;  %v1813_v42 = vpop.eup %1812 }
 0x477   :  { %v1606_v48 = vadd.f32 -1.0, %v1813_v42  ;;  %1143 = vmatprep.mubr.f32.mxu1 %v1076_v63  ;;  %v1298_v63 = vld [vmem:[#allocation12 + $0x40] sm:$0xff] }
 0x478   :  { %v1815_v7 = vpop.eup %1814  ;;  %v822_v43 = vsel %vm814_vm15, %v2187_v2, %v1605_v41  ;;  %v1055_v2 = vrot.slane %v1044_v0, %v2112_v16  ;;  %vm1400_vm15 = vcmask 1040384  }
 0x479   :  { %v1817_v45 = vpop.eup %1816  ;;  %826 = vrot.lane.b32.xlu1 %v822_v43, %s2007_s2  ;;  %v1609_v46 = vadd.f32 -1.0, %v1815_v7  ;;  %v823_v52 = vsel %vm815_vm4, %v2185_v1, %v1606_v48  ;;  %v1051_v1 = vrot.slane %v1044_v0, %v2110_v15  ;;  %v1304_v48 = vld [vmem:[#allocation12 + $0x70] sm:$0xff]  ;;  %v1313_v0 = vld [vmem:[#allocation12 + $0xb8] sm:$0xff] }
 0x47a   :  { %v1610_v51 = vadd.f32 -1.0, %v1817_v45 }
 0x47b   :  { %v930_v47 = vsel %vm922_vm0, %v2194_v10, %v1609_v46  ;;  %v1305_v46 = vld [vmem:[#allocation12 + $0x78] sm:$0xff] }
 0x47c   :  { %934 = vrot.lane.b32.xlu0 %v930_v47, %s2008_s21  ;;  %v931_v53 = vsel %vm923_vm6, %v2191_v5, %v1610_v51  ;;  %v1320_v47 = vld [vmem:[#allocation12 + $0xf0] sm:$0xff]  ;;  %v1319_v51 = vld [vmem:[#allocation12 + $0xe8] sm:$0xff] }
 0x47d   :  { %720 = vrot.lane.b32.xlu1 %v715_v49, %s1999_s11 }
 0x480   :  { %828 = vrot.lane.b32.xlu0 %v823_v52, %s2007_s2 }
 0x481   :  { %936 = vrot.lane.b32.xlu1 %v931_v53, %s2008_s21  ;;  %v1303_v53 = vld [vmem:[#allocation12 + $0x68] sm:$0xff] }
 0x4e7   :  { %v719_v54 = vpop.permute.xlu0 %718 }
 0x4e8   :  { %725 = vst.msk [vmem:[#allocation2] sm:$0xff] %vm724_vm7, %v719_v54  ;;  %v1318_v54 = vld [vmem:[#allocation12 + $0xe0] sm:$0xff] }
 0x4eb   :  { %v827_v55 = vpop.permute.xlu1 %826 }
 0x4ec   :  { %833 = vst.msk [vmem:[#allocation2] sm:$0xff] %vm832_vm8, %v827_v55  ;;  %v1302_v55 = vld [vmem:[#allocation12 + $0x60] sm:$0xff] }
 0x4ee   :  { %v935_v56 = vpop.permute.xlu0 %934 }
 0x4ef   :  { %941 = vst.msk [vmem:[#allocation2] sm:$0xff] %vm940_vm9, %v935_v56  ;;  %v721_v57 = vpop.permute.xlu1 %720  ;;  %v1317_v56 = vld [vmem:[#allocation12 + $0xd8] sm:$0xff] }
 0x4f0   :  { %726 = vst.msk [vmem:[#allocation2 + $0x8] sm:$0xff] %vm724_vm7, %v721_v57  ;;  %v1301_v57 = vld [vmem:[#allocation12 + $0x58] sm:$0xff] }
 0x4f2   :  { %v829_v58 = vpop.permute.xlu0 %828 }
 0x4f3   :  { %834 = vst.msk [vmem:[#allocation2 + $0x8] sm:$0xff] %vm832_vm8, %v829_v58  ;;  %v937_v59 = vpop.permute.xlu1 %936  ;;  %v1316_v58 = vld [vmem:[#allocation12 + $0xd0] sm:$0xff] }
 0x4f4   :  { %942 = vst.msk [vmem:[#allocation2 + $0x8] sm:$0xff] %vm940_vm9, %v937_v59  ;;  %v1300_v59 = vld [vmem:[#allocation12 + $0x50] sm:$0xff] }
 0x4f6   :  { %v943_v60 = vld [vmem:[#allocation2] sm:$0xff] }
 0x4f7   :  { %1611 = vmatmul.mubr.msk.f32.vlgmr.msra.gmra.mxu0 %vm205_vm2, %v943_v60  ;;  %v1315_v60 = vld [vmem:[#allocation12 + $0xc8] sm:$0xff] }
 0x4f8   :  { %1037 = vmatprep.mubr.f32.mxu0 %v2001_v6 }
 0x4fb   :  { %v944_v61 = vld [vmem:[#allocation2 + $0x8] sm:$0xff] }
 0x4fc   :  { %1612 = vmatmul.mubr.msk.f32.gmra.mxu0 %vm205_vm2, %v944_v61  ;;  %v1299_v61 = vld [vmem:[#allocation12 + $0x48] sm:$0xff] }
 0x4fd   :  { %1741 = vmatprep.mubr.msk.f32.mxu0 %vm2002_vm1, %v2001_v6 }
 0x5b7   :  { %v1033_v3 = vpop.f32.mrf.mxu0 }
 0x5b8   :  { %v1058_v5 = vmul.f32 %v1051_v1, %v1033_v3 }
 0x5b9   :  { %v1035_v4 = vpop.f32.mrf.mxu0 }
 0x5ba   :  { %v1059_v9 = vmul.f32 %v1055_v2, %v1035_v4 }
 0x5bc   :  { %v1039_v10 = vpop.f32.mrf.mxu0  ;;  %v1062_v11 = vadd.f32 %v1059_v9, %v1058_v5  ;;  %v1295_v5 = vld [vmem:[#allocation12 + $0x28] sm:$0xff]  ;;  %v1310_v9 = vld [vmem:[#allocation12 + $0xa0] sm:$0xff] }
 0x5bd   :  { %v1060_v13 = vmul.f32 %v1051_v1, %v1039_v10  ;;  %v1297_v1 = vld [vmem:[#allocation12 + $0x38] sm:$0xff] }
 0x5be   :  { %1063 = vadd.xlane.f32.xlu0 %v1062_v11  ;;  %v1041_v12 = vpop.f32.mrf.mxu0  ;;  %v1309_v11 = vld [vmem:[#allocation12 + $0x98] sm:$0xff] }
 0x5bf   :  { %1107 = vmatprep.subr.mxu1 %v1041_v12  ;;  %v1061_v14 = vmul.f32 %v1055_v2, %v1041_v12  ;;  %v1312_v2 = vld [vmem:[#allocation12 + $0xb0] sm:$0xff] }
 0x5c0   :  { %1108 = vmatpush1.xpose.msra.mxu1 %v1039_v10 }
 0x5c1   :  { %1109 = vmatprep.subr.mxu1 %v1035_v4  ;;  %v1065_v17 = vadd.f32 %v1061_v14, %v1060_v13  ;;  %v1308_v13 = vld [vmem:[#allocation12 + $0x90] sm:$0xff] }
 0x5c2   :  { %v1292_v14 = vld [vmem:[#allocation12 + $0x10] sm:$0xff] }
 0x5c3   :  { %1066 = vadd.xlane.f32.xlu1 %v1065_v17  ;;  %v1307_v17 = vld [vmem:[#allocation12 + $0x88] sm:$0xff] }
 0x5c4   :  { %1110 = vmatpush1.xpose.msra.mxu1 %v1033_v3 }
 0x5c5   :  { %1221 = vmatprep.subr.mxu1 %v1041_v12  ;;  %v1293_v12 = vld [vmem:[#allocation12 + $0x18] sm:$0xff] }
 0x5c7   :  { %1144 = vmatmul.mubr.f32.vlgmr.msra.gmra.mxu1 %v1072_v18  ;;  %v1291_v18 = vld [vmem:[#allocation12 + $0x8] sm:$0xff] }
 0x5c8   :  { %1222 = vmatpush1.msra.mxu1 %v1039_v10  ;;  %1257 = vmatprep.mubr.f32.mxu1 %v2001_v6  ;;  %v1294_v10 = vld [vmem:[#allocation12 + $0x20] sm:$0xff] }
 0x5c9   :  { %1223 = vmatprep.subr.mxu1 %v1035_v4  ;;  %v1311_v4 = vld [vmem:[#allocation12 + $0xa8] sm:$0xff] }
 0x5ca   :  { %1224 = vmatpush1.msra.mxu1 %v1033_v3  ;;  %v1296_v3 = vld [vmem:[#allocation12 + $0x30] sm:$0xff] }
 0x647   :  { %v1064_v19 = vpop.xlane.xlu0 %1063 }
 0x64c   :  { %v1067_v21 = vpop.xlane.xlu1 %1066 }
 0x687   :  { %v1145_v16 = vpop.f32.mrf.mxu1 }
 0x688   :  { %v1152_v20 = vrot.slane %v1145_v16, %v2110_v15  ;;  %v1306_v16 = vld [vmem:[#allocation12 + $0x80] sm:$0xff] }
 0x689   :  { %v1147_v22 = vpop.f32.mrf.mxu1 }
 0x68a   :  { %v1153_v23 = vadd.f32 %v1152_v20, %v1064_v19  ;;  %v1154_v24 = vadd.f32 %v1152_v20, %v1067_v21  ;;  %v1290_v19 = vld [vmem:[#allocation12] sm:$0xff] }
 0x68c   :  { %v1157_v25 = vmul.f32 0.2, %v1153_v23  ;;  %v1158_v26 = vmul.f32 0.2, %v1154_v24  ;;  %vm1155_vm2 = vcmp.gt.f32.partialorder %v1153_v23, 0.0  ;;  %vm1156_vm10 = vcmp.gt.f32.partialorder %v1154_v24, 0.0 }
 0x68e   :  { %v1159_v27 = vsel %vm1155_vm2, %v1153_v23, %v1157_v25  ;;  %v1160_v8 = vsel %vm1156_vm10, %v1154_v24, %v1158_v26 }
 0x68f   :  { %v1161_v28 = vadd.f32 %v1159_v27, %v2118_v38  ;;  %v1162_v30 = vadd.f32 %v1160_v8, %v2122_v50  ;;  %v1321_v50 = vld [vmem:[#allocation12 + $0xf8] sm:$0xff] }
 0x690   :  { %1647 = vmatprep.subr.mxu1 %v1321_v50 }
 0x691   :  { %v1163_v29 = vsel %vm415_vm5, %v1161_v28, -inf  ;;  %v1166_v31 = vsel %vm415_vm5, %v1162_v30, -inf }
 0x692   :  { %1164 = vmax.xlane.f32.xlu0 %v1163_v29 }
 0x696   :  { %1167 = vmax.xlane.f32.xlu0 %v1166_v31 }
 0x71b   :  { %v1165_v15 = vpop.xlane.xlu0 %1164 }
 0x71c   :  { %v1169_v32 = vsub.f32 %v1161_v28, %v1165_v15 }
 0x71e   :  { %v1171_v33 = vmul.f32 1.442695, %v1169_v32 }
 0x71f   :  { %v1168_v34 = vpop.xlane.xlu0 %1167 }
 0x720   :  { %1818 = vpow2.f32 %v1171_v33  ;;  %v1170_v35 = vsub.f32 %v1162_v30, %v1168_v34 }
 0x722   :  { %v1173_v36 = vmul.f32 1.442695, %v1170_v35 }
 0x724   :  { %1820 = vpow2.f32 %v1173_v36 }
 0x72d   :  { %v1819_v37 = vpop.eup %1818 }
 0x72e   :  { %v1175_v39 = vsel %vm415_vm5, %v1819_v37, 0.0 }
 0x72f   :  { %1176 = vadd.xlane.f32.xlu1 %v1175_v39 }
 0x731   :  { %v1821_v38 = vpop.eup %1820 }
 0x732   :  { %v1178_v40 = vsel %vm415_vm5, %v1821_v38, 0.0 }
 0x733   :  { %1179 = vadd.xlane.f32.xlu0 %v1178_v40  ;;  %v1397_v40 = vld [vmem:[%s2261_s8] sm:$0x1] }
 0x7b8   :  { %v1177_v41 = vpop.xlane.xlu1 %1176 }
 0x7b9   :  { %v1181_v42 = vmax.f32 %v1177_v41, 1e-20 }
 0x7bb   :  { %1822 = vrcp.f32 %v1181_v42 }
 0x7bc   :  { %v1180_v7 = vpop.xlane.xlu0 %1179 }
 0x7bd   :  { %v1182_v43 = vmax.f32 %v1180_v7, 1e-20 }
 0x7bf   :  { %1824 = vrcp.f32 %v1182_v43 }
 0x7c8   :  { %v1823_v44 = vpop.eup %1822 }
 0x7c9   :  { %v1185_v45 = vmul.f32 %v1823_v44, %v1819_v37 }
 0x7cb   :  { %1614 = vmatmul.mubr.msk.f32.vlgmr.msra.gmra.mxu1 %vm415_vm5, %v1185_v45  ;;  %v1398_v45 = vld [vmem:[%s2261_s8 + $0x1] sm:$0x1]  ;;  %s2009_s8 = smov [#allocation14]  }
 0x7cc   :  { %v1825_v49 = vpop.eup %1824  ;;  %1263 = vmatprep.mubr.f32.mxu1 %v2001_v6  ;;  %1648 = vmatpush3.msra.mxu1 %v1305_v46  ;;  %s1577_s27 = sshll.u32 %s2009_s8, 4  ;;  %s1578_s27 = int_to_ptr.vmem [resolvable:$true] %s1577_s27 }
 0x7cd   :  { %v1186_v52 = vmul.f32 %v1825_v49, %v1821_v38  ;;  %1649 = vmatprep.subr.mxu1 %v1320_v47  ;;  %s1961_s28 = scalar_lea.vmem %s1578_s27, 16  ;;  %s1965_s29 = scalar_lea.vmem %s1578_s27, 32 }
 0x7ce   :  { %1650 = vmatpush3.msra.mxu1 %v1304_v48  ;;  %p1962_p2 = scmp.ne.s32.totalorder %s1578_s27, %s1961_s28  ;;  %p1966_p3 = scmp.lt.s32.totalorder %s1578_s27, %s1578_s27 }
 0x7cf   :  { %1615 = vmatmul.mubr.msk.f32.gmra.mxu1 %vm415_vm5, %v1186_v52  ;;  %1651 = vmatprep.subr.mxu1 %v1319_v51  ;;  %p1967_p4 = scmp.lt.s32.totalorder %s1965_s29, %s1961_s28 }
 0x7d0   :  { %1652 = vmatpush3.msra.mxu1 %v1303_v53  ;;  %v1840_v53 = vld [vmem:[#allocation6] sm:$0xff] }
 0x7d1   :  { %1653 = vmatprep.subr.mxu1 %v1318_v54  ;;  %p1968_p5 = por %p1967_p4, %p1966_p3 }
 0x7d2   :  { %1654 = vmatpush3.msra.mxu1 %v1302_v55 }
 0x7d3   :  { %1655 = vmatprep.subr.mxu1 %v1317_v56  ;;  %p1969_p6 = pnand %p1968_p5, %p1962_p2 }
 0x7d4   :  { %1656 = vmatpush3.msra.mxu1 %v1301_v57 }
 0x7d5   :  { %1657 = vmatprep.subr.mxu1 %v1316_v58 }
 0x7d6   :  { %1658 = vmatpush3.msra.mxu1 %v1300_v59 }
 0x7d7   :  { %1659 = vmatprep.subr.mxu1 %v1315_v60 }
 0x7d8   :  { %1660 = vmatpush3.msra.mxu1 %v1299_v61 }
 0x7d9   :  { %1661 = vmatprep.subr.mxu1 %v1314_v62 }
 0x7da   :  { %1662 = vmatpush3.msra.mxu1 %v1298_v63 }
 0x7db   :  { %1663 = vmatprep.subr.mxu1 %v1313_v0 }
 0x7dc   :  { %1664 = vmatpush3.msra.mxu1 %v1297_v1 }
 0x7dd   :  { %1665 = vmatprep.subr.mxu1 %v1312_v2 }
 0x7de   :  { %1666 = vmatpush3.msra.mxu1 %v1296_v3 }
 0x7df   :  { %1667 = vmatprep.subr.mxu1 %v1311_v4 }
 0x7e0   :  { %1668 = vmatpush3.msra.mxu1 %v1295_v5 }
 0x7e1   :  { %1669 = vmatprep.subr.mxu1 %v1310_v9 }
 0x7e2   :  { %1670 = vmatpush3.msra.mxu1 %v1294_v10 }
 0x7e3   :  { %1671 = vmatprep.subr.mxu1 %v1309_v11 }
 0x7e4   :  { %1672 = vmatpush3.msra.mxu1 %v1293_v12 }
 0x7e5   :  { %1673 = vmatprep.subr.mxu1 %v1308_v13 }
 0x7e6   :  { %1674 = vmatpush3.msra.mxu1 %v1292_v14 }
 0x7e7   :  { %1675 = vmatprep.subr.mxu1 %v1307_v17 }
 0x7e8   :  { %1676 = vmatpush3.msra.mxu1 %v1291_v18 }
 0x7e9   :  { %1677 = vmatprep.subr.mxu1 %v1306_v16 }
 0x7ea   :  { %1678 = vmatpush3.msra.mxu1 %v1290_v19 }
 0x88b   :  { %v1259_v20 = vpop.f32.mrf.mxu1 }
 0x88c   :  { %v1274_v21 = vmul.f32 1.442695, %v1259_v20  ;;  %vm1270_vm12 = vcmp.gt.f32.partialorder %v1259_v20, 0.0 }
 0x88d   :  { %v1261_v22 = vpop.f32.mrf.mxu1 }
 0x88e   :  { %1826 = vpow2.f32 %v1274_v21  ;;  %v1276_v23 = vmul.f32 1.442695, %v1261_v22  ;;  %vm1271_vm11 = vcmp.gt.f32.partialorder %v1261_v22, 0.0 }
 0x88f   :  { %v1265_v24 = vpop.f32.mrf.mxu1 }
 0x890   :  { %1828 = vpow2.f32 %v1276_v23  ;;  %v1278_v25 = vmul.f32 1.442695, %v1265_v24  ;;  %vm1272_vm14 = vcmp.gt.f32.partialorder %v1265_v24, 0.0 }
 0x891   :  { %v1267_v26 = vpop.f32.mrf.mxu1 }
 0x892   :  { %1830 = vpow2.f32 %v1278_v25  ;;  %v1280_v27 = vmul.f32 1.442695, %v1267_v26  ;;  %vm1273_vm13 = vcmp.gt.f32.partialorder %v1267_v26, 0.0 }
 0x894   :  { %1832 = vpow2.f32 %v1280_v27 }
 0x89b   :  { %v1827_v8 = vpop.eup %1826 }
 0x89c   :  { %v1616_v29 = vadd.f32 -1.0, %v1827_v8 }
 0x89d   :  { %v1829_v28 = vpop.eup %1828 }
 0x89e   :  { %v1617_v30 = vadd.f32 -1.0, %v1829_v28  ;;  %v1286_v33 = vsel %vm1270_vm12, %v1259_v20, %v1616_v29 }
 0x89f   :  { %v1831_v31 = vpop.eup %1830 }
 0x8a0   :  { %v1287_v15 = vsel %vm1271_vm11, %v1261_v22, %v1617_v30  ;;  %v1618_v34 = vadd.f32 -1.0, %v1831_v31 }
 0x8a1   :  { %v1833_v32 = vpop.eup %1832  ;;  %1386 = vmatprep.mubr.f32.mxu1 %v1287_v15 }
 0x8a2   :  { %1387 = vmatmul.mubr.f32.vlgmr.msra.gmra.mxu1 %v1286_v33  ;;  %v1619_v35 = vadd.f32 -1.0, %v1833_v32  ;;  %v1288_v37 = vsel %vm1272_vm14, %v1265_v24, %v1618_v34 }
 0x8a4   :  { %v1289_v36 = vsel %vm1273_vm13, %v1267_v26, %v1619_v35 }
 0x8a5   :  { %1391 = vmatprep.mubr.f32.mxu1 %v1289_v36 }
 0x8a6   :  { %1392 = vmatmul.mubr.f32.gmra.mxu1 %v1288_v37 }
 0x962   :  { %v1679_v39 = vpop.f32.mrf.mxu1 }
 0x964   :  { %v1680_v38 = vpop.f32.mrf.mxu1 }
 0x965   :  { %v1681_v50 = vadd.f32 %v1680_v38, %v1679_v39 }
 0x966   :  { %v1682_v41 = vpop.f32.mrf.mxu1 }
 0x967   :  { %v1399_v42 = vmul.f32 %v1681_v50, %v1397_v40 }
 0x968   :  { %v1683_v7 = vpop.f32.mrf.mxu1 }
 0x969   :  { %v1684_v43 = vadd.f32 %v1683_v7, %v1682_v41  ;;  %v1401_v44 = vsel %vm1400_vm15, %v1399_v42, 0.0 }
 0x96a   :  { %1402 = vadd.xlane.f32.xlu1 %v1401_v44 }
 0x96b   :  { %1738 = vmatpush3.xpose.msra.mxu0 %v1684_v43 }
 0x96c   :  { %1739 = vmatprep.subr.mxu0 %v2001_v6 }
 0x96f   :  { %1740 = vmatpush3.xpose.msra.mxu0 %v1681_v50 }
 0x970   :  { %1744 = vmatprep.subr.mxu0 %v2001_v6 }
 0x972   :  { %1742 = vmatmul.mubr.f32.vlgmr.msra.gmra.mxu0 %v1398_v45 }
 0x973   :  { %1745 = vmatpush3.msra.mxu0 %v1684_v43  ;;  %1748 = vmatprep.mubr.msk.f32.mxu0 %vm2002_vm1, %v2001_v6 }
 0x974   :  { %1746 = vmatprep.subr.mxu0 %v2001_v6 }
 0x975   :  { %1747 = vmatpush3.msra.mxu0 %v1681_v50 }
 0x9f3   :  { %v1403_v46 = vpop.xlane.xlu1 %1402 }
 0xa32   :  { %v1470_v47 = vpop.f32.mrf.mxu0 }
 0xa33   :  { %v1474_v48 = vadd.f32 %v1470_v47, %v1403_v46 }
 0xa34   :  { %v1743_v49 = vpop.f32.mrf.mxu0 }
 0xa35   :  { %vm1475_vm0 = vcmp.gt.f32.partialorder %v1474_v48, 0.0  ;;  %v1476_v51 = vmul.f32 0.2, %v1474_v48 }
 0xa37   :  { %v1477_v52 = vsel %vm1475_vm0, %v1474_v48, %v1476_v51 }
 0xa38   :  { %v1478_v54 = vadd.f32 %v1840_v53, %v1477_v52 }
 0xa3a   :  { %v1480_v55 = vsel %vm1479_vm3, %v1478_v54, -inf }
 0xa3b   :  { %1481 = vmax.xlane.f32.xlu0 %v1480_v55 }
 0xac4   :  { %v1482_v56 = vpop.xlane.xlu0 %1481 }
 0xac5   :  { %v1483_v57 = vsub.f32 %v1478_v54, %v1482_v56 }
 0xac7   :  { %v1484_v58 = vmul.f32 1.442695, %v1483_v57 }
 0xac9   :  { %1834 = vpow2.f32 %v1484_v58 }
 0xad6   :  { %v1835_v59 = vpop.eup %1834 }
 0xad7   :  { %v1486_v60 = vsel %vm1479_vm3, %v1835_v59, 0.0 }
 0xad8   :  { %1487 = vadd.xlane.f32.xlu1 %v1486_v60 }
 0xb61   :  { %v1488_v6 = vpop.xlane.xlu1 %1487 }
 0xb62   :  { %v1489_v61 = vmax.f32 %v1488_v6, 1e-20 }
 0xb64   :  { %1836 = vrcp.f32 %v1489_v61 }
 0xb71   :  { %v1837_v62 = vpop.eup %1836 }
 0xb72   :  { %v1491_v63 = vmul.f32 %v1837_v62, %v1835_v59 }
 0xb74   :  { %1749 = vmatmul.mubr.msk.f32.vlgmr.msra.gmra.mxu0 %vm415_vm5, %v1491_v63 }
 0xc34   :  { %v1561_v0 = vpop.f32.mrf.mxu0 }
 0xc35   :  { %v1566_v1 = vmul.f32 1.442695, %v1561_v0  ;;  %vm1565_vm1 = vcmp.gt.f32.partialorder %v1561_v0, 0.0 }
 0xc36   :  { %v1750_v2 = vpop.f32.mrf.mxu0 }
 0xc37   :  { %1838 = vpow2.f32 %v1566_v1 }
 0xc44   :  { %v1839_v3 = vpop.eup %1838 }
 0xc45   :  { %v1621_v4 = vadd.f32 -1.0, %v1839_v3 }
 0xc47   :  { %v1569_v5 = vsel %vm1565_vm1, %v1561_v0, %v1621_v4 }
 0xc48   :  { %1570 = vst [vmem:[#allocation14] sm:$0x1] %v1569_v5 }
 0xc49   :  { %1972 = shalt.err (!%p1969_p6)
}
 0xc4a   :  { %1580 = dma.vmem_to_hbm [thread:$0]  %s1578_s27, 16, %s2262_s9, [#allocation5]  }
 0xc4b   :  { %1989 = dma.done.wait [#allocation5], 16  }
 0xc4c   :  { %1990 = vsyncadd [#allocation5], 4294967280 }
 0xc4d   :  { %1584 = vsyncpa [#allocation4], 1 }
 0xc4e   :  { %1585 = vsyncpa [#allocation7], 1 }
 0xc4f   :  { %1586 = vsyncpa [#allocation10], 1 }
 0xc50   :  { %1587 = vsyncpa [#allocation13], 1 }
 0xc51   :  { %1588 = vsyncpa [#allocation5], 1 }

</bundles_post_ra>
